<compile_context>
chip_gen: v7x
topology: tpu7x:2x2x1
jax: 0.10.0
libtpu: 0.0.40
codegen_flags: <defaults>
</compile_context>

<pallas_src>
import functools

import jax
import jax.numpy as jnp
from jax import lax
from jax.experimental import pallas as pl
from jax.experimental.pallas import tpu as pltpu

NUM_GROUPS = 32
EPS = 1e-6
VMEM_LIMIT = 60 * 1024 * 1024   # < 64 MiB physical on v7x, > 32 MiB default.


# ---------------------------------------------------------------------------
# Kernel 1: GroupNorm(32, eps=1e-6, affine) + fused 1x1 q/k/v projection.
# Grid: (B,).  x block = full (HW, Cp) slab; output = (HW, 3*Cp) bf16 slab.
# ---------------------------------------------------------------------------
def _norm_qkv_kernel(x_ref, gmat_ref, gamma_ref, beta_ref, wqkv_ref, bqkv_ref,
                     qkv_ref, sum_ref, ssq_ref, *, c_real, tq):
    hw, _ = x_ref.shape
    n_blk = hw // tq
    inv_n = 1.0 / float(hw * (c_real // NUM_GROUPS))
    ones_t = jnp.ones((1, tq), jnp.float32)
    gmat = gmat_ref[...]                       # (Cp, Cp) block-diag group indicator

    sum_ref[...] = jnp.zeros_like(sum_ref)
    ssq_ref[...] = jnp.zeros_like(ssq_ref)

    # Pass 1: per-channel sums (ones-row matmul keeps the reduction on the MXU).
    @pl.loop(0, n_blk)
    def _(i):
        r0 = pl.multiple_of(i * tq, tq)
        xb = x_ref[pl.ds(r0, tq), :]
        sum_ref[...] += jnp.dot(ones_t, xb, preferred_element_type=jnp.float32)

    mean = jnp.dot(sum_ref[...], gmat, preferred_element_type=jnp.float32) * inv_n

    # Pass 2: centered sum of squares (numerically stable two-pass variance).
    @pl.loop(0, n_blk)
    def _(i):
        r0 = pl.multiple_of(i * tq, tq)
        xc = x_ref[pl.ds(r0, tq), :] - mean
        ssq_ref[...] += jnp.dot(ones_t, xc * xc,
                                preferred_element_type=jnp.float32)

    var = jnp.dot(ssq_ref[...], gmat, preferred_element_type=jnp.float32) * inv_n
    scale = lax.rsqrt(var + EPS) * gamma_ref[...]            # (1, Cp)
    shift = beta_ref[...]                                     # (1, Cp)

    # Pass 3: normalize + fused QKV projection, written straight into the
    # bf16 output slab.  Softmax scale is pre-folded into the q columns of
    # wqkv/bqkv, so no extra in-kernel multiply and no separate q copy.
    @pl.loop(0, n_blk)
    def _(i):
        r0 = pl.multiple_of(i * tq, tq)
        xn = (x_ref[pl.ds(r0, tq), :] - mean) * scale + shift        # (tq, Cp)
        qkv = (jnp.dot(xn, wqkv_ref[...], preferred_element_type=jnp.float32)
               + bqkv_ref[...])                                      # (tq, 3*Cp)
        qkv_ref[pl.ds(r0, tq), :] = qkv.astype(qkv_ref.dtype)


# ---------------------------------------------------------------------------
# Kernel 2: attention for one (tq, Cp) query tile + output projection +
# residual add.  Grid: (B, HW // tq), both axes "parallel" so v7x's two
# TensorCores split the query tiles even when B == 1.
# ---------------------------------------------------------------------------
def _attn_kernel(x_ref, q_ref, k_ref, v_ref, wp_ref, bp_ref, o_ref):
    # q @ k^T contracting the last axes of both (no transposed copy of k).
    # bf16 operands, f32 accumulation.
    logits = lax.dot_general(
        q_ref[...], k_ref[...],
        dimension_numbers=(((1,), (1,)), ((), ())),
        preferred_element_type=jnp.float32)                   # (tq, HW)
    m = jnp.max(logits, axis=-1, keepdims=True)
    p = jnp.exp(logits - m)                                   # unnormalized softmax
    denom = jnp.sum(p, axis=-1, keepdims=True)                # (tq, 1)
    # bf16 p tile for the P@V matmul (f32 accumulation); normalization is
    # deferred so the divide only touches (tq, Cp), not (tq, HW).
    pv = jnp.dot(p.astype(v_ref.dtype), v_ref[...],
                 preferred_element_type=jnp.float32)          # (tq, Cp)
    attn = pv * pl.reciprocal(denom)
    proj = (jnp.dot(attn, wp_ref[...], preferred_element_type=jnp.float32)
            + bp_ref[...])                                    # (tq, Cp)
    o_ref[...] = x_ref[...] + proj


# ---------------------------------------------------------------------------
# Wrapper.
# ---------------------------------------------------------------------------
def _round_up(n, m):
    return ((n + m - 1) // m) * m


def _pick_query_tile(hw):
    # 256 first: fills the 2x256x256 MXUs on v6e/v7x; on v5e M=256 is simply
    # two passes of the 128-wide MXU (no loss).  Fall back to divisors of HW.
    for t in (256, 128, 512, 64, 32, 16, 8):
        if t <= hw and hw % t == 0:
            return t
    return hw


def _const_spec(shape, n_grid_axes):
    """Resident block: constant index map + single buffering (no wasted copy)."""
    zeros = (0,) * len(shape)
    index_map = (lambda b: zeros) if n_grid_axes == 1 else (lambda b, i: zeros)
    return pl.BlockSpec(shape, index_map, pipeline_mode=pl.Buffered(1))


def chameleon_attn_block(x_nchw, params, *, attn_dtype=jnp.bfloat16):
    """ChameleonVQVAEEncoderAttnBlock forward.  x_nchw: (B, C, H, W) float32."""
    B, C, H, W = x_nchw.shape
    assert C % NUM_GROUPS == 0, "GroupNorm(32) requires C % 32 == 0"
    HW = H * W
    Cp = _round_up(C, 128)                  # lane-dense channel dimension
    pad_c = Cp - C
    tq = _pick_query_tile(HW)
    nq = HW // tq

    # NCHW -> (B, HW, Cp) slabs, channels zero-padded to a multiple of 128.
    # TODO(synk): consume (B, HW, C) natively from the producer / fuse this
    # layout change to avoid the extra HBM round trip on both sides.
    x = jnp.transpose(x_nchw.reshape(B, C, HW), (0, 2, 1))
    x = jnp.pad(x, ((0, 0), (0, 0), (0, pad_c)))

    pad_vec = lambda v: jnp.pad(v.reshape(1, C), ((0, 0), (0, pad_c)))
    pad_mat = lambda w: jnp.pad(w, ((0, pad_c), (0, pad_c)))   # (C,C) -> (Cp,Cp)

    gamma = pad_vec(params["gamma"])
    beta = pad_vec(params["beta"])
    # 1x1 convs are matmuls on the (HW, C) layout; fuse q|k|v into a single
    # (Cp, 3*Cp) weight and fold the softmax scale C^-0.5 into the q columns.
    scale = float(C) ** (-0.5)
    wqkv = jnp.concatenate([pad_mat(params["wq"].T) * scale,
                            pad_mat(params["wk"].T),
                            pad_mat(params["wv"].T)], axis=1)
    bqkv = jnp.concatenate([pad_vec(params["bq"]) * scale,
                            pad_vec(params["bk"]),
                            pad_vec(params["bv"])], axis=1)
    wp_t = pad_mat(params["wp"].T)
    bp = pad_vec(params["bp"])

    # Block-diagonal group indicator (padded channels land in dummy groups
    # >= 32 with zero gamma/beta, so they never pollute real statistics).
    cpg = C // NUM_GROUPS
    grp = jnp.arange(Cp) // cpg
    gmat = (grp[:, None] == grp[None, :]).astype(jnp.float32)

    # ---- kernel 1: GroupNorm + fused QKV -> bf16 (B, HW, 3*Cp) slab --------
    qkv = pl.pallas_call(
        functools.partial(_norm_qkv_kernel, c_real=C, tq=tq),
        out_shape=jax.ShapeDtypeStruct((B, HW, 3 * Cp), attn_dtype),
        grid=(B,),
        in_specs=[
            pl.BlockSpec((None, HW, Cp), lambda b: (b, 0, 0)),   # x slab
            _const_spec((Cp, Cp), 1),          # gmat
            _const_spec((1, Cp), 1),           # gamma
            _const_spec((1, Cp), 1),           # beta
            _const_spec((Cp, 3 * Cp), 1),      # fused wqkv^T (scale folded)
            _const_spec((1, 3 * Cp), 1),       # fused bqkv
        ],
        out_specs=pl.BlockSpec((None, HW, 3 * Cp), lambda b: (b, 0, 0)),
        scratch_shapes=[pltpu.VMEM((1, Cp), jnp.float32),    # per-channel sums
                        pltpu.VMEM((1, Cp), jnp.float32)],   # centered sum-sq
        compiler_params=pltpu.CompilerParams(
            dimension_semantics=("parallel",),
            vmem_limit_bytes=VMEM_LIMIT),
    )(x, gmat, gamma, beta, wqkv, bqkv)

    # ---- kernel 2: attention + proj_out + residual on a (B, nq) grid -------
    out = pl.pallas_call(
        _attn_kernel,
        out_shape=jax.ShapeDtypeStruct((B, HW, Cp), jnp.float32),
        grid=(B, nq),
        in_specs=[
            pl.BlockSpec((None, tq, Cp), lambda b, i: (b, i, 0)),   # residual x
            pl.BlockSpec((None, tq, Cp), lambda b, i: (b, i, 0)),   # q tile
            pl.BlockSpec((None, HW, Cp), lambda b, i: (b, 0, 1)),   # k (full HW)
            pl.BlockSpec((None, HW, Cp), lambda b, i: (b, 0, 2)),   # v (full HW)
            _const_spec((Cp, Cp), 2),           # wp^T
            _const_spec((1, Cp), 2),            # bp
        ],
        out_specs=pl.BlockSpec((None, tq, Cp), lambda b, i: (b, i, 0)),
        compiler_params=pltpu.CompilerParams(
            dimension_semantics=("parallel", "parallel"),
            vmem_limit_bytes=VMEM_LIMIT),
    )(x, qkv, qkv, qkv, wp_t, bp)

    out = out[:, :, :C]
    return jnp.transpose(out, (0, 2, 1)).reshape(B, C, H, W)


# ---------------------------------------------------------------------------
# Pure-JAX reference (replica of the PyTorch module) for validation.
# ---------------------------------------------------------------------------
def _reference_forward(x, params):
    B, C, H, W = x.shape
    cpg = C // NUM_GROUPS
    xr = x.reshape(B, NUM_GROUPS, cpg, H, W)
    mean = xr.mean(axis=(2, 3, 4), keepdims=True)
    var = xr.var(axis=(2, 3, 4), keepdims=True)
    xn = (xr - mean) / jnp.sqrt(var + EPS)
    xn = xn.reshape(B, C, H, W)
    xn = xn * params["gamma"][None, :, None, None] + params["beta"][None, :, None, None]

    def conv1x1(h, w, b):
        return jnp.einsum("bchw,oc->bohw", h, w) + b[None, :, None, None]

    q = conv1x1(xn, params["wq"], params["bq"])
    k = conv1x1(xn, params["wk"], params["bk"])
    v = conv1x1(xn, params["wv"], params["bv"])

    HW = H * W
    qf = jnp.transpose(q.reshape(B, C, HW), (0, 2, 1))  # (B, HW, C)
    kf = k.reshape(B, C, HW)                            # (B, C, HW)
    attn = jnp.einsum("bqc,bck->bqk", qf, kf) * (float(C) ** -0.5)
    attn = jax.nn.softmax(attn, axis=2)
    vf = v.reshape(B, C, HW)
    out = jnp.einsum("bck,bqk->bcq", vf, attn).reshape(B, C, H, W)
    out = conv1x1(out, params["wp"], params["bp"])
    return x + out


if __name__ == "__main__":
    # C must be a multiple of 32 (GroupNorm groups); HW=256 exercises a full
    # query tile and C=64 exercises lane padding (Cp=128).
    B, C, H, W = 2, 64, 16, 16

    key = jax.random.PRNGKey(0)
    keys = jax.random.split(key, 12)
    x = jax.random.normal(keys[0], (B, C, H, W), dtype=jnp.float32)

    params = {
        "gamma": 1.0 + 0.05 * jax.random.normal(keys[1], (C,), jnp.float32),
        "beta": 0.05 * jax.random.normal(keys[2], (C,), jnp.float32),
        "wq": 0.1 * jax.random.normal(keys[3], (C, C), jnp.float32),
        "bq": 0.05 * jax.random.normal(keys[4], (C,), jnp.float32),
        "wk": 0.1 * jax.random.normal(keys[5], (C, C), jnp.float32),
        "bk": 0.05 * jax.random.normal(keys[6], (C,), jnp.float32),
        "wv": 0.1 * jax.random.normal(keys[7], (C, C), jnp.float32),
        "bv": 0.05 * jax.random.normal(keys[8], (C,), jnp.float32),
        "wp": 0.1 * jax.random.normal(keys[9], (C, C), jnp.float32),
        "bp": 0.05 * jax.random.normal(keys[10], (C,), jnp.float32),
    }

    out = jax.block_until_ready(chameleon_attn_block(x, params))
    ref = jax.block_until_ready(_reference_forward(x, params))

    assert out.shape == (B, C, H, W)
    # bf16 q/k/v + bf16 p operands (f32 accumulation) => relaxed tolerance
    # versus the pure-f32 v2 (2e-4); observed errors are ~1e-2 worst case.
    err = float(jnp.max(jnp.abs(out - ref)))
    assert jnp.allclose(out, ref, atol=3e-2, rtol=3e-2), f"max abs err {err}"

    print("KERNEL_OK")
</pallas_src>

<mosaic_0001>
module attributes {stable_mosaic.version = 11 : i64} {
  func.func @_norm_qkv_kernel(%arg0: i32, %arg1: memref<1x256x128xf32, #tpu.memory_space<vmem>>, %arg2: memref<128x128xf32, #tpu.memory_space<vmem>>, %arg3: memref<1x128xf32, #tpu.memory_space<vmem>>, %arg4: memref<1x128xf32, #tpu.memory_space<vmem>>, %arg5: memref<128x384xf32, #tpu.memory_space<vmem>>, %arg6: memref<1x384xf32, #tpu.memory_space<vmem>>, %arg7: memref<1x256x384xbf16, #tpu.memory_space<vmem>>, %arg8: memref<1x128xf32, #tpu.memory_space<vmem>>, %arg9: memref<1x128xf32, #tpu.memory_space<vmem>>) attributes {dimension_semantics = [#tpu.dimension_semantics<parallel>], iteration_bounds = array<i64: 2>, scalar_prefetch = 0 : i64, scratch_operands = 2 : i64, tpu.core_type = #tpu.core_type<tc>, window_params = [{transform_indices = @transform_0, window_bounds = array<i64: 1, 256, 128>}, {pipeline_mode = #tpu.pipeline_mode<synchronous>, transform_indices = @transform_1, window_bounds = array<i64: 128, 128>}, {pipeline_mode = #tpu.pipeline_mode<synchronous>, transform_indices = @transform_2, window_bounds = array<i64: 1, 128>}, {pipeline_mode = #tpu.pipeline_mode<synchronous>, transform_indices = @transform_3, window_bounds = array<i64: 1, 128>}, {pipeline_mode = #tpu.pipeline_mode<synchronous>, transform_indices = @transform_4, window_bounds = array<i64: 128, 384>}, {pipeline_mode = #tpu.pipeline_mode<synchronous>, transform_indices = @transform_5, window_bounds = array<i64: 1, 384>}, {transform_indices = @transform_6, window_bounds = array<i64: 1, 256, 384>}]} {
    %cst = arith.constant 1.000000e+00 : f32
    %0 = vector.broadcast %cst : f32 to vector<1x256xf32>
    %c0 = arith.constant 0 : index
    %c0_0 = arith.constant 0 : index
    %1 = vector.load %arg2[%c0, %c0_0] : memref<128x128xf32, #tpu.memory_space<vmem>>, vector<128x128xf32>
    %cst_1 = arith.constant 0.000000e+00 : f32
    %2 = vector.broadcast %cst_1 : f32 to vector<1x128xf32>
    %c0_2 = arith.constant 0 : index
    %c0_3 = arith.constant 0 : index
    %3 = vector.load %arg8[%c0_2, %c0_3] : memref<1x128xf32, #tpu.memory_space<vmem>>, vector<1x128xf32>
    tpu.vector_store %arg8[%c0_2, %c0_3], %2 {strides = array<i32>} : memref<1x128xf32, #tpu.memory_space<vmem>>, vector<1x128xf32>,
    %cst_4 = arith.constant 0.000000e+00 : f32
    %4 = vector.broadcast %cst_4 : f32 to vector<1x128xf32>
    %c0_5 = arith.constant 0 : index
    %c0_6 = arith.constant 0 : index
    %5 = vector.load %arg9[%c0_5, %c0_6] : memref<1x128xf32, #tpu.memory_space<vmem>>, vector<1x128xf32>
    tpu.vector_store %arg9[%c0_5, %c0_6], %4 {strides = array<i32>} : memref<1x128xf32, #tpu.memory_space<vmem>>, vector<1x128xf32>,
    %c0_i32 = arith.constant 0 : i32
    %c1_i32 = arith.constant 1 : i32
    %6 = arith.muli %c0_i32, %c1_i32 : i32
    %c0_i32_7 = arith.constant 0 : i32
    %7 = arith.addi %c0_i32_7, %6 : i32
    %c256_i32 = arith.constant 256 : i32
    %8 = arith.muli %7, %c256_i32 : i32
    %9 = tpu.assume_multiple %8, 256 : i32
    %c0_8 = arith.constant 0 : index
    %10 = arith.index_cast %9 : i32 to index
    %c0_9 = arith.constant 0 : index
    %11 = vector.load %arg1[%c0_8, %10, %c0_9] : memref<1x256x128xf32, #tpu.memory_space<vmem>>, vector<1x256x128xf32>
    %12 = vector.shape_cast %11 : vector<1x256x128xf32> to vector<256x128xf32>
    %c0_10 = arith.constant 0 : index
    %c0_11 = arith.constant 0 : index
    %13 = vector.load %arg8[%c0_10, %c0_11] : memref<1x128xf32, #tpu.memory_space<vmem>>, vector<1x128xf32>
    %cst_12 = arith.constant dense<0.000000e+00> : vector<1x128xf32>
    %14 = tpu.matmul %0, %12, %cst_12 {dimension_numbers = #tpu.dot_dimension_numbers<[1], [0], [0], [1], [0, 0, 1, 1], [], []>} : vector<1x256xf32>, vector<256x128xf32>, vector<1x128xf32> -> vector<1x128xf32>
    %15 = arith.addf %13, %14 : vector<1x128xf32>
    %c0_13 = arith.constant 0 : index
    %c0_14 = arith.constant 0 : index
    %16 = vector.load %arg8[%c0_13, %c0_14] : memref<1x128xf32, #tpu.memory_space<vmem>>, vector<1x128xf32>
    tpu.vector_store %arg8[%c0_13, %c0_14], %15 {strides = array<i32>} : memref<1x128xf32, #tpu.memory_space<vmem>>, vector<1x128xf32>,
    %c1_i32_15 = arith.constant 1 : i32
    %c0_16 = arith.constant 0 : index
    %c0_17 = arith.constant 0 : index
    %17 = vector.load %arg8[%c0_16, %c0_17] : memref<1x128xf32, #tpu.memory_space<vmem>>, vector<1x128xf32>
    %cst_18 = arith.constant dense<0.000000e+00> : vector<1x128xf32>
    %18 = tpu.matmul %17, %1, %cst_18 {dimension_numbers = #tpu.dot_dimension_numbers<[1], [0], [0], [1], [0, 0, 1, 1], [], []>} : vector<1x128xf32>, vector<128x128xf32>, vector<1x128xf32> -> vector<1x128xf32>
    %cst_19 = arith.constant 0.001953125 : f32
    %19 = vector.broadcast %cst_19 : f32 to vector<1x128xf32>
    %20 = arith.mulf %18, %19 : vector<1x128xf32>
    %c0_i32_20 = arith.constant 0 : i32
    %c1_i32_21 = arith.constant 1 : i32
    %21 = arith.muli %c0_i32_20, %c1_i32_21 : i32
    %c0_i32_22 = arith.constant 0 : i32
    %22 = arith.addi %c0_i32_22, %21 : i32
    %c256_i32_23 = arith.constant 256 : i32
    %23 = arith.muli %22, %c256_i32_23 : i32
    %24 = tpu.assume_multiple %23, 256 : i32
    %c0_24 = arith.constant 0 : index
    %25 = arith.index_cast %24 : i32 to index
    %c0_25 = arith.constant 0 : index
    %26 = vector.load %arg1[%c0_24, %25, %c0_25] : memref<1x256x128xf32, #tpu.memory_space<vmem>>, vector<1x256x128xf32>
    %27 = vector.shape_cast %26 : vector<1x256x128xf32> to vector<256x128xf32>
    %28 = vector.broadcast %20 : vector<1x128xf32> to vector<256x128xf32>
    %29 = arith.subf %27, %28 : vector<256x128xf32>
    %c0_26 = arith.constant 0 : index
    %c0_27 = arith.constant 0 : index
    %30 = vector.load %arg9[%c0_26, %c0_27] : memref<1x128xf32, #tpu.memory_space<vmem>>, vector<1x128xf32>
    %31 = arith.mulf %29, %29 : vector<256x128xf32>
    %cst_28 = arith.constant dense<0.000000e+00> : vector<1x128xf32>
    %32 = tpu.matmul %0, %31, %cst_28 {dimension_numbers = #tpu.dot_dimension_numbers<[1], [0], [0], [1], [0, 0, 1, 1], [], []>} : vector<1x256xf32>, vector<256x128xf32>, vector<1x128xf32> -> vector<1x128xf32>
    %33 = arith.addf %30, %32 : vector<1x128xf32>
    %c0_29 = arith.constant 0 : index
    %c0_30 = arith.constant 0 : index
    %34 = vector.load %arg9[%c0_29, %c0_30] : memref<1x128xf32, #tpu.memory_space<vmem>>, vector<1x128xf32>
    tpu.vector_store %arg9[%c0_29, %c0_30], %33 {strides = array<i32>} : memref<1x128xf32, #tpu.memory_space<vmem>>, vector<1x128xf32>,
    %c1_i32_31 = arith.constant 1 : i32
    %c0_32 = arith.constant 0 : index
    %c0_33 = arith.constant 0 : index
    %35 = vector.load %arg9[%c0_32, %c0_33] : memref<1x128xf32, #tpu.memory_space<vmem>>, vector<1x128xf32>
    %cst_34 = arith.constant dense<0.000000e+00> : vector<1x128xf32>
    %36 = tpu.matmul %35, %1, %cst_34 {dimension_numbers = #tpu.dot_dimension_numbers<[1], [0], [0], [1], [0, 0, 1, 1], [], []>} : vector<1x128xf32>, vector<128x128xf32>, vector<1x128xf32> -> vector<1x128xf32>
    %cst_35 = arith.constant 0.001953125 : f32
    %37 = vector.broadcast %cst_35 : f32 to vector<1x128xf32>
    %38 = arith.mulf %36, %37 : vector<1x128xf32>
    %cst_36 = arith.constant 9.99999997E-7 : f32
    %39 = vector.broadcast %cst_36 : f32 to vector<1x128xf32>
    %40 = arith.addf %38, %39 : vector<1x128xf32>
    %41 = math.rsqrt %40 : vector<1x128xf32>
    %c0_37 = arith.constant 0 : index
    %c0_38 = arith.constant 0 : index
    %42 = vector.load %arg3[%c0_37, %c0_38] : memref<1x128xf32, #tpu.memory_space<vmem>>, vector<1x128xf32>
    %43 = arith.mulf %41, %42 : vector<1x128xf32>
    %c0_39 = arith.constant 0 : index
    %c0_40 = arith.constant 0 : index
    %44 = vector.load %arg4[%c0_39, %c0_40] : memref<1x128xf32, #tpu.memory_space<vmem>>, vector<1x128xf32>
    %c0_i32_41 = arith.constant 0 : i32
    %c1_i32_42 = arith.constant 1 : i32
    %45 = arith.muli %c0_i32_41, %c1_i32_42 : i32
    %c0_i32_43 = arith.constant 0 : i32
    %46 = arith.addi %c0_i32_43, %45 : i32
    %c256_i32_44 = arith.constant 256 : i32
    %47 = arith.muli %46, %c256_i32_44 : i32
    %48 = tpu.assume_multiple %47, 256 : i32
    %c0_45 = arith.constant 0 : index
    %49 = arith.index_cast %48 : i32 to index
    %c0_46 = arith.constant 0 : index
    %50 = vector.load %arg1[%c0_45, %49, %c0_46] : memref<1x256x128xf32, #tpu.memory_space<vmem>>, vector<1x256x128xf32>
    %51 = vector.shape_cast %50 : vector<1x256x128xf32> to vector<256x128xf32>
    %52 = vector.broadcast %20 : vector<1x128xf32> to vector<256x128xf32>
    %53 = arith.subf %51, %52 : vector<256x128xf32>
    %54 = vector.broadcast %43 : vector<1x128xf32> to vector<256x128xf32>
    %55 = arith.mulf %53, %54 : vector<256x128xf32>
    %56 = vector.broadcast %44 : vector<1x128xf32> to vector<256x128xf32>
    %57 = arith.addf %55, %56 : vector<256x128xf32>
    %c0_47 = arith.constant 0 : index
    %c0_48 = arith.constant 0 : index
    %58 = vector.load %arg5[%c0_47, %c0_48] : memref<128x384xf32, #tpu.memory_space<vmem>>, vector<128x384xf32>
    %cst_49 = arith.constant dense<0.000000e+00> : vector<256x384xf32>
    %59 = tpu.matmul %57, %58, %cst_49 {dimension_numbers = #tpu.dot_dimension_numbers<[1], [0], [0], [1], [0, 0, 1, 1], [], []>} : vector<256x128xf32>, vector<128x384xf32>, vector<256x384xf32> -> vector<256x384xf32>
    %c0_50 = arith.constant 0 : index
    %c0_51 = arith.constant 0 : index
    %60 = vector.load %arg6[%c0_50, %c0_51] : memref<1x384xf32, #tpu.memory_space<vmem>>, vector<1x384xf32>
    %61 = vector.broadcast %60 : vector<1x384xf32> to vector<256x384xf32>
    %62 = arith.addf %59, %61 : vector<256x384xf32>
    %63 = arith.truncf %62 : vector<256x384xf32> to vector<256x384xbf16>
    %c0_52 = arith.constant 0 : index
    %64 = arith.index_cast %48 : i32 to index
    %c0_53 = arith.constant 0 : index
    %65 = vector.load %arg7[%c0_52, %64, %c0_53] : memref<1x256x384xbf16, #tpu.memory_space<vmem>>, vector<1x256x384xbf16>
    %66 = vector.shape_cast %65 : vector<1x256x384xbf16> to vector<256x384xbf16>
    %67 = vector.shape_cast %63 : vector<256x384xbf16> to vector<1x256x384xbf16>
    tpu.vector_store %arg7[%c0_52, %64, %c0_53], %67 {strides = array<i32>} : memref<1x256x384xbf16, #tpu.memory_space<vmem>>, vector<1x256x384xbf16>,
    %c1_i32_54 = arith.constant 1 : i32
    return
  }
  func.func @transform_0(%arg0: i32) -> (i32, i32, i32) {
    %c0_i32 = arith.constant 0 : i32
    %c0_i32_0 = arith.constant 0 : i32
    %c0_i32_1 = arith.constant 0 : i32
    return %arg0, %c0_i32, %c0_i32_0 : i32, i32, i32
  }
  func.func @transform_1(%arg0: i32) -> (i32, i32) {
    %c0_i32 = arith.constant 0 : i32
    %c0_i32_0 = arith.constant 0 : i32
    %c0_i32_1 = arith.constant 0 : i32
    return %c0_i32, %c0_i32_0 : i32, i32
  }
  func.func @transform_2(%arg0: i32) -> (i32, i32) {
    %c0_i32 = arith.constant 0 : i32
    %c0_i32_0 = arith.constant 0 : i32
    %c0_i32_1 = arith.constant 0 : i32
    return %c0_i32, %c0_i32_0 : i32, i32
  }
  func.func @transform_3(%arg0: i32) -> (i32, i32) {
    %c0_i32 = arith.constant 0 : i32
    %c0_i32_0 = arith.constant 0 : i32
    %c0_i32_1 = arith.constant 0 : i32
    return %c0_i32, %c0_i32_0 : i32, i32
  }
  func.func @transform_4(%arg0: i32) -> (i32, i32) {
    %c0_i32 = arith.constant 0 : i32
    %c0_i32_0 = arith.constant 0 : i32
    %c0_i32_1 = arith.constant 0 : i32
    return %c0_i32, %c0_i32_0 : i32, i32
  }
  func.func @transform_5(%arg0: i32) -> (i32, i32) {
    %c0_i32 = arith.constant 0 : i32
    %c0_i32_0 = arith.constant 0 : i32
    %c0_i32_1 = arith.constant 0 : i32
    return %c0_i32, %c0_i32_0 : i32, i32
  }
  func.func @transform_6(%arg0: i32) -> (i32, i32, i32) {
    %c0_i32 = arith.constant 0 : i32
    %c0_i32_0 = arith.constant 0 : i32
    %c0_i32_1 = arith.constant 0 : i32
    return %arg0, %c0_i32, %c0_i32_0 : i32, i32, i32
  }
}

</mosaic_0001>

<bundles_post_ra>
// kernel: tpu_custom_call.1
= control target key start
LH: loop header
LB: loop body
LE: loop exit
PB: predicated region body
PF: predicated region fallthrough
CT: control target
= control target key end

     0   :  { %11 = vsyncpa [#allocation5], 0  ;;  %s3742_s0 = inlined_call_operand.hbm [shape: f32[2,256,128], index: 0, kind: input, shape index: {}]   ;;  %s3743_s1 = inlined_call_operand.hbm [shape: f32[128,128], index: 1, kind: input, shape index: {}]   ;;  %s3744_s2 = inlined_call_operand.vmem [shape: f32[1,128], index: 2, kind: input, shape index: {}]   ;;  %s3745_s3 = inlined_call_operand.vmem [shape: f32[1,128], index: 3, kind: input, shape index: {}]   ;;  %s3746_s4 = inlined_call_operand.hbm [shape: f32[128,384], index: 4, kind: input, shape index: {}]   ;;  %s3747_s5 = inlined_call_operand.vmem [shape: f32[1,384], index: 5, kind: input, shape index: {}]   ;;  %s3748_s6 = inlined_call_operand.hbm [shape: bf16[2,256,384], index: 6, kind: output, shape index: {}]  }
   0x1   :  { %13 = vsyncpa [#allocation5 + $0x1], 0 }
   0x2   :  { %14 = vsyncpa [#allocation8], 0 }
   0x3   :  { %15 = vsyncpa [#allocation6], 0 }
   0x4   :  { %17 = vsyncpa [#allocation6 + $0x1], 0  ;;  %s2833_s21 = smov 0   ;;  %s2835_s22 = smov 0  }
   0x5   :  { %s2837_s23 = smov 0   ;;  %s2839_s24 = smov 0  }
   0x6 LB: > { %s2854_s25 = sadd.s32 4294967295, %s2782_s24   ;;  %s1922_s26 = sadd.s32 4294967294, %s2782_s24   ;;  %s2782_s24 = sphi %s2839_s24, %s3768_s24   ;;  %s2778_s23 = sphi %s2837_s23, %s3767_s23   ;;  %s2774_s22 = sphi %s2835_s22, %s3766_s22   ;;  %s2770_s21 = sphi %s2833_s21, %s3765_s21  }
   0x7   : > { %p43_p0 = scmp.ne.s32.totalorder %s2774_s22, %s2770_s21  ;;  %p3749_p1 = scmp.eq.s32.totalorder %s2854_s25, 0 }
   0x8   : > { %p178_p3 = scmp.eq.s32.totalorder %s1922_s26, 1  ;;  %p1923_p5 = scmp.ge.s32.totalorder %s2782_s24, 1 }
   0x9   : > { %p2863_p4 = por %p3749_p1, %p43_p0  ;;  %p185_p7 = scmp.lt.s32.totalorder %s2782_s24, 3 }
   0xa   : > { %p2868_p6 = por %p178_p3, %p43_p0  ;;  %s2784_s30 = smov [#allocation7]  }
   0xb   : > { %s3752_s27 = scalar_select %p2863_p4, 1, 0 }
   0xc   : > { %s3753_s28 = scalar_select %p2868_p6, 1, 0 }
   0xd   : > { %p2873_p8 = pnand %p1923_p5, %p185_p7  ;;  %s197_s7 = sshll.u32 %s2784_s30, 4  ;;  %s2877_s7 = int_to_ptr.vmem [resolvable:$true] %s197_s7 }
   0xe   : > { %s2785_s9 = smov [#allocation9]   ;;  %s2626_s13 = scalar_lea.hbm %s3743_s1, 2048 }
   0xf   : > { %p2559_p9 = pneg %p2873_p8  ;;  %s216_s10 = sshll.u32 %s2785_s9, 4  ;;  %s2888_s10 = int_to_ptr.vmem [resolvable:$true] %s216_s10 }
  0x10   : > { %p2627_p12 = scmp.ne.s32.totalorder %s3743_s1, %s2626_s13  ;;  %p2633_p5 = scmp.lt.u32.totalorder %s2626_s13, %s3743_s1 }
  0x11   : > { %p2884_p11 = pnand %p2559_p9, %p3749_p1 }
  0x13   : > { %p2628_p13 = pneg %p2884_p11 }
  0x15   : > { %p2629_p0 = pnand %p2628_p13, %p2627_p12 }
  0x17   : > { %p2630_p3 = pneg %p2629_p0 }
  0x19   : > { %p2635_p7 = pnand %p2633_p5, %p2630_p3 }
  0x1b   : > { %2638 = shalt.err (!%p2635_p7)
}
  0x1c   : > { %s2639_s18 = scalar_lea.vmem %s2877_s7, 2048  ;;  %p2647_p2 = scmp.lt.s32.totalorder %s2877_s7, %s2877_s7 }
  0x1d   : > { %p2640_p9 = scmp.ne.s32.totalorder %s2877_s7, %s2639_s18  ;;  %p2648_p12 = scmp.lt.s32.totalorder %s2639_s18, %s2639_s18 }
  0x1f   : > { %p2642_p10 = pnand %p2640_p9, %p2628_p13  ;;  %p2649_p0 = por %p2648_p12, %p2647_p2 }
  0x21   : > { %p2643_p1 = pneg %p2642_p10 }
  0x23   : > { %p2650_p6 = pnand %p2649_p0, %p2643_p1 }
  0x25   : > { %2653 = shalt.err (!%p2650_p6)
}
  0x26   : > { %s2786_s19 = smov 128   ;;  %s2787_s20 = smov 8  }
  0x27   : > { %2562 = dma.hbm_to_vmem [thread:$0]  (!%p2884_p11), %s3743_s1, 2048, %s2877_s7, [#allocation8], %s2786_s19, %s2786_s19, %s2787_s20  }
  0x28   : > { %s2654_s12 = scalar_lea.hbm %s3746_s4, 6144 }
  0x29   : > { %p2655_p1 = scmp.ne.s32.totalorder %s3746_s4, %s2654_s12  ;;  %p2661_p10 = scmp.lt.u32.totalorder %s2654_s12, %s3746_s4 }
  0x2b   : > { %p2657_p2 = pnand %p2655_p1, %p2628_p13 }
  0x2d   : > { %p2658_p6 = pneg %p2657_p2 }
  0x2f   : > { %p2663_p3 = pnand %p2661_p10, %p2658_p6 }
  0x31   : > { %2666 = shalt.err (!%p2663_p3)
}
  0x32   : > { %s2667_s7 = scalar_lea.vmem %s2888_s10, 6144  ;;  %p2675_p12 = scmp.lt.s32.totalorder %s2888_s10, %s2888_s10 }
  0x33   : > { %p2668_p5 = scmp.ne.s32.totalorder %s2888_s10, %s2667_s7  ;;  %p2676_p0 = scmp.lt.s32.totalorder %s2667_s7, %s2667_s7 }
  0x35   : > { %p2670_p7 = pnand %p2668_p5, %p2628_p13  ;;  %p2677_p1 = por %p2676_p0, %p2675_p12 }
  0x37   : > { %p2671_p9 = pneg %p2670_p7 }
  0x39   : > { %p2678_p2 = pnand %p2677_p1, %p2671_p9 }
  0x3b   : > { %2681 = shalt.err (!%p2678_p2)
}
  0x3c   : > { %s2788_s17 = smov 384   ;;  %s2789_s18 = smov 24  }
  0x3d   : > { %2565 = dma.hbm_to_vmem [thread:$0]  (!%p2884_p11), %s3746_s4, 6144, %s2888_s10, [#allocation8], %s2788_s17, %s2788_s17, %s2789_s18  }
  0x3e   : > { %s2946_s9 = sadd.s32 1, %s2782_s24   ;;  %s30_s12 = sadd.s32 1, %s2778_s23 }
  0x3f   : > { %s27_s11 = ssub.s32 %s2782_s24, %s2946_s9  ;;  %p37_p6 = scmp.ne.s32.totalorder %s2778_s23, %s2774_s22 }
  0x40   : > { %p28_p13 = scmp.eq.s32.totalorder %s27_s11, 0  ;;  %p38_p10 = scmp.eq.s32.totalorder %s2782_s24, 0 }
  0x41   : > { %p3756_p5 = scmp.eq.s32.totalorder %s2854_s25, 1  ;;  %p2576_p9 = scmp.lt.s32.totalorder %s2782_s24, 2 }
  0x42   : > { %s2955_s13 = scalar_select %p28_p13, %s2778_s23, %s30_s12  }
  0x43   : > { %p39_p3 = por %p38_p10, %p37_p6  ;;  %p2959_p7 = por %p3756_p5, %p37_p6 }
  0x44   : > { %s233_s8 = sand.u32 1, %s2778_s23   ;;  %s2002_s10 = sshll.u32 %s2782_s24, 12 }
  0x45   : > { %s3757_s14 = scalar_select %p2959_p7, 1, 0 }
  0x46   : > { %s1927_s15 = sshll.u32 %s233_s8, 8  ;;  %s2969_s17 = scalar_lea.hbm %s3742_s0, %s2002_s10 }
  0x47   : > { %s237_s18 = scalar_lea.vmem [#allocation4], %s1927_s15  ;;  %p2973_p11 = pnand %p2576_p9, %p39_p3 }
  0x48   : > { %s244_s26 = sshll.u32 %s237_s18, 4  ;;  %s2977_s11 = scalar_lea.sflag [#allocation5], %s233_s8  ;;  %s2971_s26 = int_to_ptr.vmem [resolvable:$true] %s244_s26 }
  0x49   : > { %s2682_s12 = scalar_lea.hbm %s2969_s17, 4096  ;;  %p2684_p0 = pneg %p2973_p11 }
  0x4a   : > { %p2683_p12 = scmp.ne.s32.totalorder %s2969_s17, %s2682_s12  ;;  %s2687_s16 = scalar_lea.hbm %s3742_s0, 8192 }
  0x4b   : > { %p2688_p13 = scmp.lt.u32.totalorder %s2969_s17, %s3742_s0  ;;  %p2689_p6 = scmp.lt.u32.totalorder %s2687_s16, %s2682_s12 }
  0x4c   : > { %p2685_p1 = pnand %p2684_p0, %p2683_p12  ;;  %p2691_p3 = scmp.lt.u32.totalorder %s2682_s12, %s2969_s17 }
  0x4d   : > { %p2690_p10 = por %p2689_p6, %p2688_p13 }
  0x4e   : > { %p2686_p2 = pneg %p2685_p1 }
  0x4f   : > { %p2692_p5 = por %p2691_p3, %p2690_p10 }
  0x51   : > { %p2693_p9 = pnand %p2692_p5, %p2686_p2 }
  0x53   : > { %2696 = shalt.err (!%p2693_p9)
}
  0x54   : > { %s2697_s8 = scalar_lea.vmem %s2971_s26, 4096  ;;  %s2790_s15 = smov [#allocation4]  }
  0x55   : > { %p2698_p12 = scmp.ne.s32.totalorder %s2971_s26, %s2697_s8  ;;  %s2702_s10 = sshll.u32 %s2790_s15, 4  ;;  %s2703_s10 = int_to_ptr.vmem [resolvable:$false] %s2702_s10 }
  0x56   : > { %s2704_s7 = scalar_lea.vmem %s2703_s10, 8192  ;;  %p2705_p4 = scmp.lt.s32.totalorder %s2971_s26, %s2703_s10 }
  0x57   : > { %p2700_p1 = pnand %p2698_p12, %p2684_p0  ;;  %p2706_p13 = scmp.lt.s32.totalorder %s2704_s7, %s2697_s8 }
  0x59   : > { %p2701_p7 = pneg %p2700_p1  ;;  %p2707_p6 = por %p2706_p13, %p2705_p4 }
  0x5b   : > { %p2708_p10 = pnand %p2707_p6, %p2701_p7 }
  0x5d   : > { %2711 = shalt.err (!%p2708_p10)
}
  0x5e   : > { %2569 = dma.hbm_to_vmem [thread:$0]  (!%p2973_p11), %s2969_s17, 4096, %s2971_s26, %s2977_s11, %s2786_s19, %s2786_s19, %s2787_s20  }
  0x5f   : > { %256 = sbr.rel (%p2873_p8) target bundleno = 1436 (0x59c), region = 44  ;;  %s3011_s12 = sand.u32 (!%p2873_p8), 1, %s2774_s22  }
  0x60   : > { %s1931_s16 = sshll.u32 (!%p2873_p8), %s3011_s12, 8  ;;  %s259_s18 = scalar_lea.sflag (!%p2873_p8), [#allocation5], %s3011_s12 }
  0x61   : > { %s3015_s8 = scalar_lea.vmem (!%p2873_p8), [#allocation4], %s1931_s16  ;;  %p3759_p4 = scmp.ne.s32.totalorder (!%p2873_p8), %s3752_s27, 0 }
  0x66   : > { %2757 = dma.done.wait (%p3759_p4), %s259_s18, 4096  }
  0x67   : > { %2759 = vsyncadd (%p3759_p4), %s259_s18, 4294963200  ;;  %p3760_p7 = scmp.eq.s32.totalorder %s2854_s25, 0 }
  0x69   : > { %2761 = dma.done.wait (%p3760_p7), [#allocation8], 8192   ;;  %p3761_p8 = pmov %p3760_p7 }
  0x6a   : > { %v2791_v0 = vmov 1.0   ;;  %v3028_v1 = vld [vmem:[%s3015_s8 + $0x80] sm:$0xff]  ;;  %v3031_v2 = vld [vmem:[%s3015_s8 + $0x88] sm:$0xff]  ;;  %v3042_v6 = vld [vmem:[%s3015_s8 + $0x90] sm:$0xff]  ;;  %v2792_v52 = vmov 0.0|0.0   ;;  %vm2794_vm0 = vmmov 0  }
  0x6b   : > { %2763 = vsyncadd (%p3761_p8), [#allocation8], 4294959104  ;;  %414 = vmatprep.mubr.f32.mxu1 %v2791_v0  ;;  %659 = vmatprep.mubr.f32.mxu0 %v2791_v0  ;;  %v3034_v3 = vld [vmem:[%s3015_s8] sm:$0xff]  ;;  %v2369_v4 = vpack.c.bf16 %v3031_v2, %v3028_v1  ;;  %v3039_v5 = vld [vmem:[%s3015_s8 + $0x8] sm:$0xff]  ;;  %s2545_s30 = smul.u32 384, %s3011_s12  ;;  %p3762_p0 = scmp.ne.s32.totalorder %s3757_s14, 0 }
  0x6c   : > { %v3045_v7 = vld [vmem:[%s3015_s8 + $0x98] sm:$0xff]  ;;  %v2371_v8 = vpack.c.bf16 %v3039_v5, %v3034_v3  ;;  %v3052_v10 = vld [vmem:[%s3015_s8 + $0x10] sm:$0xff]  ;;  %v3058_v12 = vld [vmem:[%s3015_s8 + $0xa0] sm:$0xff]  ;;  %s2546_s15 = smul.u32 6144, %s2854_s25  ;;  %s1817_s25 = scalar_lea.sflag [#allocation6], %s3011_s12 }
  0x6d   : > { %v2373_v9 = vpack.c.bf16 %v3045_v7, %v3042_v6  ;;  %v3055_v11 = vld [vmem:[%s3015_s8 + $0x18] sm:$0xff]  ;;  %2370 = vmatprep.subr.bf16.mxu1 %v2369_v4  ;;  %v3061_v13 = vld [vmem:[%s3015_s8 + $0xa8] sm:$0xff]  ;;  %v3068_v16 = vld [vmem:[%s3015_s8 + $0x20] sm:$0xff]  ;;  %s3534_s11 = scalar_lea.vmem [#allocation10], %s2545_s30  ;;  %s2795_s27 = smov [#allocation10]  }
  0x6e   : > { %2372 = vmatpush3.bf16.msra.mxu1 %v2371_v8  ;;  %v2375_v14 = vpack.c.bf16 %v3055_v11, %v3052_v10  ;;  %v2377_v15 = vpack.c.bf16 %v3061_v13, %v3058_v12  ;;  %v3071_v17 = vld [vmem:[%s3015_s8 + $0x28] sm:$0xff]  ;;  %v3074_v18 = vld [vmem:[%s3015_s8 + $0xb0] sm:$0xff]  ;;  %v3077_v19 = vld [vmem:[%s3015_s8 + $0xb8] sm:$0xff]  ;;  %v2793_v8 = vmov 0.0   ;;  %s1830_s10 = sshll.u32 %s3534_s11, 4  ;;  %s3695_s18 = scalar_lea.hbm %s3748_s6, %s2546_s15  ;;  %s3697_s10 = int_to_ptr.vmem [resolvable:$true] %s1830_s10 }
  0x6f   : > { %2374 = vmatprep.subr.bf16.mxu1 %v2373_v9  ;;  %v2379_v20 = vpack.c.bf16 %v3071_v17, %v3068_v16  ;;  %v2381_v21 = vpack.c.bf16 %v3077_v19, %v3074_v18  ;;  %v3084_v22 = vld [vmem:[%s3015_s8 + $0x30] sm:$0xff]  ;;  %v3087_v23 = vld [vmem:[%s3015_s8 + $0x38] sm:$0xff]  ;;  %v3090_v24 = vld [vmem:[%s3015_s8 + $0xc0] sm:$0xff]  ;;  %315 = vst [vmem:[#allocation2] sm:$0x1] %v2793_v8  ;;  %s2716_s29 = sshll.u32 %s2795_s27, 4  ;;  %s2717_s29 = int_to_ptr.vmem [resolvable:$false] %s2716_s29 }
  0x70   : > { %v3093_v25 = vld [vmem:[%s3015_s8 + $0xc8] sm:$0xff]  ;;  %v2383_v26 = vpack.c.bf16 %v3087_v23, %v3084_v22  ;;  %v3100_v28 = vld [vmem:[%s3015_s8 + $0x40] sm:$0xff]  ;;  %v3106_v30 = vld [vmem:[%s3015_s8 + $0xd0] sm:$0xff]  ;;  %316 = vst [vmem:[#allocation3] sm:$0x1] %v2793_v8  ;;  %s2718_s19 = scalar_lea.vmem %s2717_s29, 12288  ;;  %p2719_p5 = scmp.lt.s32.totalorder %s3697_s10, %s2717_s29 }
  0x71   : > { %v2385_v27 = vpack.c.bf16 %v3093_v25, %v3090_v24  ;;  %v3103_v29 = vld [vmem:[%s3015_s8 + $0x48] sm:$0xff]  ;;  %v3109_v31 = vld [vmem:[%s3015_s8 + $0xd8] sm:$0xff]  ;;  %v3116_v34 = vld [vmem:[%s3015_s8 + $0x50] sm:$0xff] }
  0x72   : > { %2376 = vmatpush3.bf16.msra.mxu1 %v2375_v14  ;;  %v2387_v32 = vpack.c.bf16 %v3103_v29, %v3100_v28  ;;  %v2389_v33 = vpack.c.bf16 %v3109_v31, %v3106_v30  ;;  %v3119_v35 = vld [vmem:[%s3015_s8 + $0x58] sm:$0xff]  ;;  %v3122_v36 = vld [vmem:[%s3015_s8 + $0xe0] sm:$0xff]  ;;  %v3125_v37 = vld [vmem:[%s3015_s8 + $0xe8] sm:$0xff] }
  0x73   : > { %2378 = vmatprep.subr.bf16.mxu1 %v2377_v15  ;;  %v2391_v38 = vpack.c.bf16 %v3119_v35, %v3116_v34  ;;  %v2393_v39 = vpack.c.bf16 %v3125_v37, %v3122_v36  ;;  %v3132_v40 = vld [vmem:[%s3015_s8 + $0x60] sm:$0xff]  ;;  %v3135_v41 = vld [vmem:[%s3015_s8 + $0x68] sm:$0xff]  ;;  %v3138_v42 = vld [vmem:[%s3015_s8 + $0xf0] sm:$0xff] }
  0x74   : > { %v3141_v43 = vld [vmem:[%s3015_s8 + $0xf8] sm:$0xff]  ;;  %v2395_v44 = vpack.c.bf16 %v3135_v41, %v3132_v40  ;;  %v3148_v46 = vld [vmem:[%s3015_s8 + $0x70] sm:$0xff]  ;;  %v299_v49 = vld [vmem:[#allocation7] sm:$0xff] }
  0x75   : > { %v2397_v45 = vpack.c.bf16 %v3141_v43, %v3138_v42  ;;  %v3151_v47 = vld [vmem:[%s3015_s8 + $0x78] sm:$0xff]  ;;  %v300_v50 = vld [vmem:[#allocation7 + $0x8] sm:$0xff]  ;;  %v301_v53 = vld [vmem:[#allocation7 + $0x10] sm:$0xff] }
  0x76   : > { %2380 = vmatpush3.bf16.msra.mxu1 %v2379_v20  ;;  %v2399_v48 = vpack.c.bf16 %v3151_v47, %v3148_v46  ;;  %v2402_v51 = vpack.c.bf16 %v300_v50, %v299_v49  ;;  %v302_v54 = vld [vmem:[#allocation7 + $0x18] sm:$0xff]  ;;  %v303_v56 = vld [vmem:[#allocation7 + $0x20] sm:$0xff]  ;;  %v304_v57 = vld [vmem:[#allocation7 + $0x28] sm:$0xff]  ;;  %v526_v50 = vlaneseq }
  0x77   : > { %2382 = vmatprep.subr.bf16.mxu1 %v2381_v21  ;;  %v2405_v55 = vpack.c.bf16 %v302_v54, %v301_v53  ;;  %v2408_v58 = vpack.c.bf16 %v304_v57, %v303_v56  ;;  %v305_v59 = vld [vmem:[#allocation7 + $0x30] sm:$0xff]  ;;  %v306_v60 = vld [vmem:[#allocation7 + $0x38] sm:$0xff]  ;;  %v307_v62 = vld [vmem:[#allocation7 + $0x40] sm:$0xff] }
  0x78   : > { %v2411_v61 = vpack.c.bf16 %v306_v60, %v305_v59  ;;  %v308_v63 = vld [vmem:[#allocation7 + $0x48] sm:$0xff]  ;;  %v309_v9 = vld [vmem:[#allocation7 + $0x50] sm:$0xff]  ;;  %v310_v14 = vld [vmem:[#allocation7 + $0x58] sm:$0xff] }
  0x79   : > { %v2414_v4 = vpack.c.bf16 %v308_v63, %v307_v62  ;;  %v2417_v15 = vpack.c.bf16 %v310_v14, %v309_v9  ;;  %v311_v20 = vld [vmem:[#allocation7 + $0x60] sm:$0xff]  ;;  %v312_v21 = vld [vmem:[#allocation7 + $0x68] sm:$0xff] }
  0x7a   : > { %2384 = vmatpush3.bf16.msra.mxu1 %v2383_v26  ;;  %v2420_v26 = vpack.c.bf16 %v312_v21, %v311_v20 }
  0x7b   : > { %2386 = vmatprep.subr.bf16.mxu1 %v2385_v27  ;;  %v313_v27 = vld [vmem:[#allocation7 + $0x70] sm:$0xff] }
  0x7e   : > { %2388 = vmatpush3.bf16.msra.mxu1 %v2387_v32  ;;  %v314_v32 = vld [vmem:[#allocation7 + $0x78] sm:$0xff] }
  0x7f   : > { %2390 = vmatprep.subr.bf16.mxu1 %v2389_v33  ;;  %v2423_v33 = vpack.c.bf16 %v314_v32, %v313_v27 }
  0x82   : > { %2392 = vmatpush3.bf16.msra.mxu1 %v2391_v38 }
  0x83   : > { %2394 = vmatprep.subr.bf16.mxu1 %v2393_v39  ;;  %v349_v39 = vld [vmem:[#allocation2] sm:$0x1] }
  0x86   : > { %2396 = vmatpush3.bf16.msra.mxu1 %v2395_v44 }
  0x87   : > { %2398 = vmatprep.subr.bf16.mxu1 %v2397_v45 }
  0x8a   : > { %2400 = vmatpush3.bf16.msra.mxu1 %v2399_v48 }
  0x8b   : > { %2401 = vmatprep.subr.bf16.mxu1 %v2792_v52 }
  0x8d   : > { %415 = vmatmul.mubr.f32.vlgmr.msra.gmra.mrb[0].mxu1 %v2791_v0 }
  0x8e   : > { %2403 = vmatpush3.bf16.msra.mxu1 %v2402_v51  ;;  %2251 = vmatprep.mubr.msk.f32.mxu1 %vm2794_vm0, %v2793_v8 }
  0x8f   : > { %2404 = vmatprep.subr.bf16.mxu1 %v2792_v52 }
  0x92   : > { %2406 = vmatpush3.bf16.msra.mxu1 %v2405_v55 }
  0x93   : > { %2407 = vmatprep.subr.bf16.mxu1 %v2792_v52 }
  0x96   : > { %2409 = vmatpush3.bf16.msra.mxu1 %v2408_v58 }
  0x97   : > { %2410 = vmatprep.subr.bf16.mxu1 %v2792_v52 }
  0x9a   : > { %2412 = vmatpush3.bf16.msra.mxu1 %v2411_v61 }
  0x9b   : > { %2413 = vmatprep.subr.bf16.mxu1 %v2792_v52 }
  0x9e   : > { %2415 = vmatpush3.bf16.msra.mxu1 %v2414_v4 }
  0x9f   : > { %2416 = vmatprep.subr.bf16.mxu1 %v2792_v52 }
  0xa2   : > { %2418 = vmatpush3.bf16.msra.mxu1 %v2417_v15 }
  0xa3   : > { %2419 = vmatprep.subr.bf16.mxu1 %v2792_v52 }
  0xa6   : > { %2421 = vmatpush3.bf16.msra.mxu1 %v2420_v26 }
  0xa7   : > { %2422 = vmatprep.subr.bf16.mxu1 %v2792_v52 }
  0xaa   : > { %2424 = vmatpush3.bf16.msra.mxu1 %v2423_v33 }
  0xab   : > { %2457 = vmatprep.subr.bf16.mxu1 %v2792_v52 }
 0x160   : > { %v2099_v38 = vpop.f32.mrb[0].mxu1 }
 0x161   : > { %v2100_v44 = vpop.f32.mrb[1].mxu1 }
 0x162   : > { %v2101_v45 = vadd.f32 %v2100_v44, %v2099_v38 }
 0x164   : > { %v420_v48 = vadd.f32 %v2101_v45, %v349_v39 }
 0x166   : > { %421 = vst [vmem:[#allocation2] sm:$0x1] %v420_v48 }
 0x16d   : > { %v422_v49 = vld [vmem:[#allocation2] sm:$0x1] }
 0x16e   : > { %2252 = vmatmul.mubr.f32.vlgmr.msra.gmra.mrb[2].mxu1 %v422_v49 }
 0x16f   : > { %2459 = vmatpush3.bf16.msra.mxu1 %v2402_v51  ;;  %2286 = vmatprep.mubr.msk.f32.mxu1 %vm2794_vm0, %v2793_v8  ;;  %v3176_v51 = vshrl.u32 %v526_v50, 7 }
 0x170   : > { %2460 = vmatprep.subr.bf16.mxu1 %v2792_v52 }
 0x171   : > { %v3179_v53 = vsub.s32 0, %v3176_v51 }
 0x173   : > { %2462 = vmatpush3.bf16.msra.mxu1 %v2405_v55 }
 0x174   : > { %2463 = vmatprep.subr.bf16.mxu1 %v2792_v52 }
 0x177   : > { %2465 = vmatpush3.bf16.msra.mxu1 %v2408_v58 }
 0x178   : > { %2466 = vmatprep.subr.bf16.mxu1 %v2792_v52 }
 0x17b   : > { %2468 = vmatpush3.bf16.msra.mxu1 %v2411_v61 }
 0x17c   : > { %2469 = vmatprep.subr.bf16.mxu1 %v2792_v52 }
 0x17f   : > { %2471 = vmatpush3.bf16.msra.mxu1 %v2414_v4 }
 0x180   : > { %2472 = vmatprep.subr.bf16.mxu1 %v2792_v52 }
 0x183   : > { %2474 = vmatpush3.bf16.msra.mxu1 %v2417_v15 }
 0x184   : > { %2475 = vmatprep.subr.bf16.mxu1 %v2792_v52 }
 0x187   : > { %2477 = vmatpush3.bf16.msra.mxu1 %v2420_v26 }
 0x188   : > { %2478 = vmatprep.subr.bf16.mxu1 %v2792_v52 }
 0x18b   : > { %2480 = vmatpush3.bf16.msra.mxu1 %v2423_v33 }
 0x241   : > { %v489_v54 = vpop.f32.mrb[2].mxu1 }
 0x242   : > { %v493_v55 = vmul.f32 0.001953125, %v489_v54  ;;  %v2253_v56 = vpop.f32.mrb[3].mxu1 }
 0x244   : > { %v3182_v57 = vrot.slane %v493_v55, %v3179_v53 }
 0x246   : > { %v3186_v58 = vsub.f32 %v3028_v1, %v3182_v57  ;;  %v3190_v52 = vsub.f32 %v3031_v2, %v3182_v57  ;;  %v3194_v59 = vsub.f32 %v3034_v3, %v3182_v57  ;;  %v3198_v60 = vsub.f32 %v3039_v5, %v3182_v57 }
 0x247   : > { %v3202_v61 = vsub.f32 %v3042_v6, %v3182_v57  ;;  %v3206_v1 = vsub.f32 %v3045_v7, %v3182_v57  ;;  %v3210_v2 = vsub.f32 %v3052_v10, %v3182_v57  ;;  %v3214_v3 = vsub.f32 %v3055_v11, %v3182_v57 }
 0x248   : > { %v579_v5 = vmul.f32 %v3186_v58, %v3186_v58  ;;  %v580_v62 = vmul.f32 %v3190_v52, %v3190_v52  ;;  %v563_v6 = vmul.f32 %v3194_v59, %v3194_v59  ;;  %v564_v7 = vmul.f32 %v3198_v60, %v3198_v60 }
 0x249   : > { %v581_v10 = vmul.f32 %v3202_v61, %v3202_v61  ;;  %v582_v63 = vmul.f32 %v3206_v1, %v3206_v1  ;;  %v565_v11 = vmul.f32 %v3210_v2, %v3210_v2  ;;  %v3232_v14 = vsub.f32 %v3058_v12, %v3182_v57 }
 0x24a   : > { %v2425_v4 = vpack.c.bf16 %v580_v62, %v579_v5  ;;  %v2427_v9 = vpack.c.bf16 %v564_v7, %v563_v6  ;;  %v3236_v15 = vsub.f32 %v3061_v13, %v3182_v57  ;;  %v566_v21 = vmul.f32 %v3214_v3, %v3214_v3 }
 0x24b   : > { %v2429_v20 = vpack.c.bf16 %v582_v63, %v581_v10  ;;  %v3242_v26 = vsub.f32 %v3068_v16, %v3182_v57  ;;  %v3246_v27 = vsub.f32 %v3071_v17, %v3182_v57  ;;  %v583_v12 = vmul.f32 %v3232_v14, %v3232_v14 }
 0x24c   : > { %2426 = vmatprep.subr.bf16.mxu0 %v2425_v4  ;;  %v584_v13 = vmul.f32 %v3236_v15, %v3236_v15  ;;  %v3254_v32 = vsub.f32 %v3074_v18, %v3182_v57  ;;  %v3258_v33 = vsub.f32 %v3077_v19, %v3182_v57  ;;  %v3266_v38 = vsub.f32 %v3084_v22, %v3182_v57 }
 0x24d   : > { %2428 = vmatpush3.bf16.msra.mxu0 %v2427_v9  ;;  %v567_v16 = vmul.f32 %v3242_v26, %v3242_v26  ;;  %v568_v17 = vmul.f32 %v3246_v27, %v3246_v27  ;;  %v3270_v18 = vsub.f32 %v3087_v23, %v3182_v57  ;;  %v2431_v39 = vpack.c.bf16 %v566_v21, %v565_v11 }
 0x24e   : > { %2430 = vmatprep.subr.bf16.mxu0 %v2429_v20  ;;  %v2433_v44 = vpack.c.bf16 %v584_v13, %v583_v12  ;;  %v585_v19 = vmul.f32 %v3254_v32, %v3254_v32  ;;  %v586_v45 = vmul.f32 %v3258_v33, %v3258_v33  ;;  %v3278_v48 = vsub.f32 %v3090_v24, %v3182_v57 }
 0x24f   : > { %v555_v22 = vsub.f32 %v3093_v25, %v3182_v57  ;;  %v2435_v49 = vpack.c.bf16 %v568_v17, %v567_v16  ;;  %v569_v23 = vmul.f32 %v3266_v38, %v3266_v38  ;;  %v570_v50 = vmul.f32 %v3270_v18, %v3270_v18 }
 0x250   : > { %v3288_v54 = vsub.f32 %v3100_v28, %v3182_v57  ;;  %v3292_v24 = vsub.f32 %v3103_v29, %v3182_v57  ;;  %v3296_v25 = vsub.f32 %v3106_v30, %v3182_v57  ;;  %v557_v55 = vsub.f32 %v3109_v31, %v3182_v57 }
 0x251   : > { %2432 = vmatpush3.bf16.msra.mxu0 %v2431_v39  ;;  %v2437_v56 = vpack.c.bf16 %v586_v45, %v585_v19  ;;  %v587_v5 = vmul.f32 %v3278_v48, %v3278_v48  ;;  %v588_v62 = vmul.f32 %v555_v22, %v555_v22  ;;  %v2439_v28 = vpack.c.bf16 %v570_v50, %v569_v23  ;;  %v886_v50 = vld [vmem:[#allocation9 + $0x20] sm:$0xff] }
 0x252   : > { %2434 = vmatprep.subr.bf16.mxu0 %v2433_v44  ;;  %v3304_v6 = vsub.f32 %v3116_v34, %v3182_v57  ;;  %v3308_v29 = vsub.f32 %v3119_v35, %v3182_v57  ;;  %v571_v30 = vmul.f32 %v3288_v54, %v3288_v54  ;;  %v572_v31 = vmul.f32 %v3292_v24, %v3292_v24 }
 0x253   : > { %v589_v7 = vmul.f32 %v3296_v25, %v3296_v25  ;;  %v590_v10 = vmul.f32 %v557_v55, %v557_v55  ;;  %v2441_v63 = vpack.c.bf16 %v588_v62, %v587_v5  ;;  %v558_v11 = vsub.f32 %v3122_v36, %v3182_v57  ;;  %v882_v55 = vld [vmem:[#allocation9] sm:$0xff]  ;;  %v885_v5 = vld [vmem:[#allocation9 + $0x18] sm:$0xff]  ;;  %v884_v62 = vld [vmem:[#allocation9 + $0x10] sm:$0xff] }
 0x254   : > { %v559_v34 = vsub.f32 %v3125_v37, %v3182_v57  ;;  %v573_v35 = vmul.f32 %v3304_v6, %v3304_v6  ;;  %v574_v4 = vmul.f32 %v3308_v29, %v3308_v29  ;;  %v2443_v9 = vpack.c.bf16 %v572_v31, %v571_v30 }
 0x255   : > { %2436 = vmatpush3.bf16.msra.mxu0 %v2435_v49  ;;  %v2445_v20 = vpack.c.bf16 %v590_v10, %v589_v7  ;;  %v3326_v21 = vsub.f32 %v3132_v40, %v3182_v57  ;;  %v3330_v36 = vsub.f32 %v3135_v41, %v3182_v57  ;;  %v591_v12 = vmul.f32 %v558_v11, %v558_v11  ;;  %v889_v7 = vld [vmem:[#allocation9 + $0x38] sm:$0xff]  ;;  %v892_v10 = vld [vmem:[#allocation9 + $0x50] sm:$0xff] }
 0x256   : > { %2438 = vmatprep.subr.bf16.mxu0 %v2437_v56  ;;  %v592_v37 = vmul.f32 %v559_v34, %v559_v34  ;;  %v560_v13 = vsub.f32 %v3138_v42, %v3182_v57  ;;  %v561_v16 = vsub.f32 %v3141_v43, %v3182_v57  ;;  %v2447_v17 = vpack.c.bf16 %v574_v4, %v573_v35  ;;  %v891_v34 = vld [vmem:[#allocation9 + $0x48] sm:$0xff]  ;;  %v562_v4 = vld [vmem:[#allocation3] sm:$0x1] }
 0x257   : > { %v575_v39 = vmul.f32 %v3326_v21, %v3326_v21  ;;  %v576_v40 = vmul.f32 %v3330_v36, %v3330_v36  ;;  %v3342_v41 = vsub.f32 %v3148_v46, %v3182_v57  ;;  %v3346_v44 = vsub.f32 %v3151_v47, %v3182_v57  ;;  %v883_v47 = vld [vmem:[#allocation9 + $0x8] sm:$0xff] }
 0x258   : > { %v2449_v42 = vpack.c.bf16 %v592_v37, %v591_v12  ;;  %v593_v19 = vmul.f32 %v560_v13, %v560_v13  ;;  %v594_v43 = vmul.f32 %v561_v16, %v561_v16  ;;  %v2481_v56 = vpack.c.bf16 %v886_v50, %v883_v47  ;;  %v890_v37 = vld [vmem:[#allocation9 + $0x40] sm:$0xff]  ;;  %v893_v13 = vld [vmem:[#allocation9 + $0x58] sm:$0xff]  ;;  %v904_v47 = vld [vmem:[#allocation9 + $0xb0] sm:$0xff] }
 0x259   : > { %2440 = vmatpush3.bf16.msra.mxu0 %v2439_v28  ;;  %v2451_v45 = vpack.c.bf16 %v576_v40, %v575_v39  ;;  %v577_v22 = vmul.f32 %v3342_v41, %v3342_v41  ;;  %v578_v49 = vmul.f32 %v3346_v44, %v3346_v44  ;;  %v887_v28 = vld [vmem:[#allocation9 + $0x28] sm:$0xff]  ;;  %v2483_v30 = vpack.c.bf16 %v885_v5, %v882_v55  ;;  %v898_v40 = vld [vmem:[#allocation9 + $0x80] sm:$0xff]  ;;  %v900_v50 = vld [vmem:[#allocation9 + $0x90] sm:$0xff] }
 0x25a   : > { %2442 = vmatprep.subr.bf16.mxu0 %v2441_v63  ;;  %v2453_v23 = vpack.c.bf16 %v594_v43, %v593_v19  ;;  %v2513_v31 = vpack.c.bf16 %v887_v28, %v884_v62  ;;  %v888_v63 = vld [vmem:[#allocation9 + $0x30] sm:$0xff]  ;;  %v2485_v11 = vpack.c.bf16 %v892_v10, %v889_v7  ;;  %v2517_v16 = vpack.c.bf16 %v893_v13, %v890_v37  ;;  %v895_v39 = vld [vmem:[#allocation9 + $0x68] sm:$0xff]  ;;  %v894_v19 = vld [vmem:[#allocation9 + $0x60] sm:$0xff] }
 0x25b   : > { %v2455_v46 = vpack.c.bf16 %v578_v49, %v577_v22  ;;  %v897_v43 = vld [vmem:[#allocation9 + $0x78] sm:$0xff]  ;;  %v899_v49 = vld [vmem:[#allocation9 + $0x88] sm:$0xff]  ;;  %v902_v5 = vld [vmem:[#allocation9 + $0xa0] sm:$0xff] }
 0x25c   : > { %2514 = vmatprep.subr.bf16.mxu1 %v2513_v31  ;;  %v2491_v22 = vpack.c.bf16 %v897_v43, %v894_v19  ;;  %v905_v62 = vld [vmem:[#allocation9 + $0xb8] sm:$0xff]  ;;  %v910_v7 = vld [vmem:[#allocation9 + $0xe0] sm:$0xff]  ;;  %v915_v13 = vld [vmem:[#allocation9 + $0x108] sm:$0xff] }
 0x25d   : > { %2444 = vmatpush3.bf16.msra.mxu0 %v2443_v9  ;;  %v906_v10 = vld [vmem:[#allocation9 + $0xc0] sm:$0xff]  ;;  %v920_v43 = vld [vmem:[#allocation9 + $0x130] sm:$0xff] }
 0x25e   : > { %2446 = vmatprep.subr.bf16.mxu0 %v2445_v20 }
 0x261   : > { %2448 = vmatpush3.bf16.msra.mxu0 %v2447_v17 }
 0x262   : > { %2450 = vmatprep.subr.bf16.mxu0 %v2449_v42  ;;  %v2489_v42 = vpack.c.bf16 %v898_v40, %v895_v39  ;;  %v919_v39 = vld [vmem:[#allocation9 + $0x128] sm:$0xff]  ;;  %v922_v40 = vld [vmem:[#allocation9 + $0x140] sm:$0xff] }
 0x265   : > { %2452 = vmatpush3.bf16.msra.mxu0 %v2451_v45  ;;  %v896_v45 = vld [vmem:[#allocation9 + $0x70] sm:$0xff] }
 0x266   : > { %2454 = vmatprep.subr.bf16.mxu0 %v2453_v23  ;;  %v2521_v23 = vpack.c.bf16 %v899_v49, %v896_v45  ;;  %v923_v45 = vld [vmem:[#allocation9 + $0x148] sm:$0xff]  ;;  %v918_v49 = vld [vmem:[#allocation9 + $0x120] sm:$0xff] }
 0x269   : > { %2456 = vmatpush3.bf16.msra.mxu0 %v2455_v46  ;;  %v901_v46 = vld [vmem:[#allocation9 + $0x98] sm:$0xff] }
 0x26a   : > { %2482 = vmatprep.subr.bf16.mxu0 %v2481_v56  ;;  %v2493_v55 = vpack.c.bf16 %v904_v47, %v901_v46  ;;  %v903_v56 = vld [vmem:[#allocation9 + $0xa8] sm:$0xff]  ;;  %v925_v46 = vld [vmem:[#allocation9 + $0x158] sm:$0xff]  ;;  %v928_v47 = vld [vmem:[#allocation9 + $0x170] sm:$0xff] }
 0x26b   : > { %v2495_v28 = vpack.c.bf16 %v903_v56, %v900_v50  ;;  %v2537_v50 = vpack.c.bf16 %v923_v45, %v920_v43  ;;  %v926_v56 = vld [vmem:[#allocation9 + $0x160] sm:$0xff]  ;;  %v771_v43 = vld [vmem:[%s3015_s8 + $0xd8] sm:$0xff]  ;;  %v773_v45 = vld [vmem:[%s3015_s8 + $0xe8] sm:$0xff] }
 0x26c   : > { %660 = vmatmul.mubr.f32.vlgmr.msra.gmra.mrb[0].mxu0 %v2791_v0  ;;  %v2487_v0 = vpack.c.bf16 %v891_v34, %v888_v63  ;;  %v908_v34 = vld [vmem:[#allocation9 + $0xd0] sm:$0xff] }
 0x26d   : > { %1011 = vmatprep.mubr.f32.mxu0 %v2793_v8  ;;  %2484 = vmatpush1.bf16.msra.mxu0 %v2483_v30  ;;  %v2525_v30 = vpack.c.bf16 %v905_v62, %v902_v5  ;;  %v929_v5 = vld [vmem:[#allocation9 + $0x178] sm:$0xff]  ;;  %v2509_v62 = vpack.c.bf16 %v928_v47, %v925_v46  ;;  %v803_v47 = vsub.f32 %v771_v43, %v3182_v57 }
 0x26e   : > { %2486 = vmatprep.subr.bf16.mxu0 %v2485_v11  ;;  %v909_v11 = vld [vmem:[#allocation9 + $0xd8] sm:$0xff] }
 0x271   : > { %2488 = vmatpush1.bf16.msra.mxu0 %v2487_v0  ;;  %v911_v0 = vld [vmem:[#allocation9 + $0xe8] sm:$0xff] }
 0x272   : > { %2490 = vmatprep.subr.bf16.mxu0 %v2489_v42 }
 0x275   : > { %2492 = vmatpush1.bf16.msra.mxu0 %v2491_v22  ;;  %v2505_v22 = vpack.c.bf16 %v922_v40, %v919_v39 }
 0x276   : > { %2494 = vmatprep.subr.bf16.mxu0 %v2493_v55 }
 0x279   : > { %2496 = vmatpush1.bf16.msra.mxu0 %v2495_v28  ;;  %v924_v28 = vld [vmem:[#allocation9 + $0x150] sm:$0xff] }
 0x33f   : > { %v2151_v35 = vpop.f32.mrb[0].mxu0 }
 0x340   : > { %v2152_v9 = vpop.f32.mrb[1].mxu0 }
 0x341   : > { %v2153_v20 = vadd.f32 %v2152_v9, %v2151_v35  ;;  %v2499_v35 = vpack.c.bf16 %v909_v11, %v906_v10  ;;  %v913_v9 = vld [vmem:[#allocation9 + $0xf8] sm:$0xff] }
 0x343   : > { %v665_v12 = vadd.f32 %v2153_v20, %v562_v4  ;;  %v2529_v4 = vpack.c.bf16 %v911_v0, %v908_v34  ;;  %v916_v20 = vld [vmem:[#allocation9 + $0x110] sm:$0xff]  ;;  %v741_v0 = vld [vmem:[%s3744_s2] sm:$0x1] }
 0x344   : > { %v2501_v37 = vpack.c.bf16 %v916_v20, %v913_v9  ;;  %v3363_v20 = vld [vmem:[%s3745_s3] ss:$0 sm:$0xff] }
 0x345   : > { %666 = vst [vmem:[#allocation3] sm:$0x1] %v665_v12  ;;  %v912_v12 = vld [vmem:[#allocation9 + $0xf0] sm:$0xff] }
 0x346   : > { %v2503_v19 = vpack.c.bf16 %v915_v13, %v912_v12 }
 0x34c   : > { %v667_v17 = vld [vmem:[#allocation3] sm:$0x1] }
 0x34d   : > { %2287 = vmatmul.mubr.f32.vlgmr.msra.gmra.mrb[4].mxu1 %v667_v17  ;;  %v917_v17 = vld [vmem:[#allocation9 + $0x118] sm:$0xff] }
 0x34e   : > { %2516 = vmatpush3.bf16.msra.mxu1 %v2513_v31  ;;  %v907_v31 = vld [vmem:[#allocation9 + $0xc8] sm:$0xff] }
 0x34f   : > { %2518 = vmatprep.subr.bf16.mxu1 %v2517_v16  ;;  %v2497_v63 = vpack.c.bf16 %v910_v7, %v907_v31  ;;  %v2541_v31 = vpack.c.bf16 %v929_v5, %v926_v56 }
 0x351   : > { %2498 = vmatprep.subr.bf16.mxu0 %v2497_v63 }
 0x352   : > { %2520 = vmatpush3.bf16.msra.mxu1 %v2517_v16  ;;  %v914_v16 = vld [vmem:[#allocation9 + $0x100] sm:$0xff]  ;;  %2500 = vmatpush1.bf16.msra.mxu0 %v2499_v35 }
 0x353   : > { %2522 = vmatprep.subr.bf16.mxu1 %v2521_v23  ;;  %v2533_v42 = vpack.c.bf16 %v917_v17, %v914_v16  ;;  %2502 = vmatprep.subr.bf16.mxu0 %v2501_v37 }
 0x356   : > { %2524 = vmatpush3.bf16.msra.mxu1 %v2521_v23  ;;  %v921_v23 = vld [vmem:[#allocation9 + $0x138] sm:$0xff]  ;;  %2504 = vmatpush1.bf16.msra.mxu0 %v2503_v19 }
 0x357   : > { %2526 = vmatprep.subr.bf16.mxu1 %v2525_v30  ;;  %v2507_v55 = vpack.c.bf16 %v921_v23, %v918_v49  ;;  %2506 = vmatprep.subr.bf16.mxu0 %v2505_v22  ;;  %v775_v23 = vld [vmem:[%s3015_s8 + $0xf8] sm:$0xff] }
 0x35a   : > { %2528 = vmatpush3.bf16.msra.mxu1 %v2525_v30  ;;  %v927_v30 = vld [vmem:[#allocation9 + $0x168] sm:$0xff]  ;;  %2508 = vmatpush1.bf16.msra.mxu0 %v2507_v55 }
 0x35b   : > { %2530 = vmatprep.subr.bf16.mxu1 %v2529_v4  ;;  %v2511_v7 = vpack.c.bf16 %v927_v30, %v924_v28  ;;  %2510 = vmatprep.subr.bf16.mxu0 %v2509_v62  ;;  %v807_v28 = vsub.f32 %v775_v23, %v3182_v57 }
 0x35e   : > { %2532 = vmatpush3.bf16.msra.mxu1 %v2529_v4  ;;  %2512 = vmatpush1.bf16.msra.mxu0 %v2511_v7 }
 0x35f   : > { %2534 = vmatprep.subr.bf16.mxu1 %v2533_v42 }
 0x362   : > { %2536 = vmatpush3.bf16.msra.mxu1 %v2533_v42 }
 0x363   : > { %2538 = vmatprep.subr.bf16.mxu1 %v2537_v50 }
 0x366   : > { %2540 = vmatpush3.bf16.msra.mxu1 %v2537_v50 }
 0x367   : > { %2542 = vmatprep.subr.bf16.mxu1 %v2541_v31 }
 0x36a   : > { %2544 = vmatpush3.bf16.msra.mxu1 %v2541_v31 }
 0x420   : > { %v734_v10 = vpop.f32.mrb[4].mxu1 }
 0x421   : > { %v738_v63 = vmul.f32 0.001953125, %v734_v10  ;;  %v2288_v11 = vpop.f32.mrb[5].mxu1 }
 0x423   : > { %v739_v34 = vadd.f32 1e-06, %v738_v63 }
 0x425   : > { %2624 = vrsqrt.f32 %v739_v34 }
 0x42f   : > { %v2625_v35 = vpop.eup %2624 }
 0x430   : > { %v742_v4 = vmul.f32 %v2625_v35, %v741_v0 }
 0x432   : > { %v3358_v9 = vrot.slane %v742_v4, %v3179_v53 }
 0x434   : > { %v812_v12 = vmul.f32 %v3358_v9, %v3194_v59  ;;  %v813_v37 = vmul.f32 %v3358_v9, %v3198_v60  ;;  %v814_v13 = vmul.f32 %v3358_v9, %v3210_v2  ;;  %v815_v39 = vmul.f32 %v3358_v9, %v3214_v3  ;;  %v769_v3 = vld [vmem:[%s3015_s8 + $0xc8] sm:$0xff] }
 0x435   : > { %v816_v60 = vmul.f32 %v3358_v9, %v3242_v26  ;;  %v817_v40 = vmul.f32 %v3358_v9, %v3246_v27  ;;  %v818_v19 = vmul.f32 %v3358_v9, %v3266_v38  ;;  %v772_v26 = vld [vmem:[%s3015_s8 + $0xe0] sm:$0xff]  ;;  %v819_v22 = vmul.f32 %v3358_v9, %v3270_v18  ;;  %v774_v27 = vld [vmem:[%s3015_s8 + $0xf0] sm:$0xff]  ;;  %s2712_s8 = scalar_lea.vmem %s3697_s10, 6144 }
 0x436   : > { %v850_v16 = vadd.f32 %v3363_v20, %v812_v12  ;;  %v851_v17 = vadd.f32 %v3363_v20, %v813_v37  ;;  %v852_v59 = vadd.f32 %v3363_v20, %v814_v13  ;;  %v853_v2 = vadd.f32 %v3363_v20, %v815_v39  ;;  %p2713_p11 = scmp.ne.s32.totalorder %s3697_s10, %s2712_s8  ;;  %p2720_p9 = scmp.lt.s32.totalorder %s2718_s19, %s2712_s8 }
 0x437   : > { %v854_v42 = vadd.f32 %v3363_v20, %v816_v60  ;;  %v801_v49 = vsub.f32 %v769_v3, %v3182_v57  ;;  %v855_v46 = vadd.f32 %v3363_v20, %v817_v40  ;;  %v804_v38 = vsub.f32 %v772_v26, %v3182_v57 }
 0x438   : > { %1012 = vmatmul.mubr.f32.vlgmr.msra.gmra.mrb[2].mxu0 %v850_v16  ;;  %2321 = vmatprep.mubr.f32.mxu1 %v850_v16  ;;  %v856_v50 = vadd.f32 %v3363_v20, %v818_v19  ;;  %v820_v55 = vmul.f32 %v3358_v9, %v3288_v54  ;;  %v805_v18 = vsub.f32 %v773_v45, %v3182_v57  ;;  %p2714_p2 = pnand %p2713_p11, %p3762_p0  ;;  %p2721_p12 = por %p2720_p9, %p2719_p5 }
 0x439   : > { %2322 = vmatmul.mubr.f32.vlgmr.msra.gmra.mrb[6].mxu1 %v851_v17  ;;  %1017 = vmatprep.mubr.f32.mxu0 %v2793_v8  ;;  %v3402_v56 = vmul.f32 %v3358_v9, %v801_v49  ;;  %v3407_v5 = vmul.f32 %v3358_v9, %v803_v47  ;;  %v806_v62 = vsub.f32 %v774_v27, %v3182_v57  ;;  %v942_v49 = vsub.s32 2, %v3176_v51 }
 0x43a   : > { %2324 = vmatprep.mubr.f32.mxu1 %v852_v59  ;;  %v857_v30 = vadd.f32 %v3363_v20, %v819_v22  ;;  %v3413_v54 = vmul.f32 %v3358_v9, %v804_v38  ;;  %v821_v31 = vmul.f32 %v3358_v9, %v3292_v24  ;;  %v3418_v7 = vmul.f32 %v3358_v9, %v805_v18  ;;  %p2715_p3 = pneg %p2714_p2 }
 0x43b   : > { %v3421_v10 = vmul.f32 %v3358_v9, %v806_v62  ;;  %v3424_v63 = vmul.f32 %v3358_v9, %v807_v28  ;;  %v858_v57 = vadd.f32 %v3363_v20, %v820_v55  ;;  %v822_v11 = vmul.f32 %v3358_v9, %v3304_v6 }
 0x43c   : > { %1018 = vmatmul.mubr.f32.gmra.mrb[4].mxu0 %v851_v17  ;;  %v859_v24 = vadd.f32 %v3363_v20, %v821_v31  ;;  %v823_v34 = vmul.f32 %v3358_v9, %v3308_v29  ;;  %v824_v35 = vmul.f32 %v3358_v9, %v3326_v21  ;;  %v825_v4 = vmul.f32 %v3358_v9, %v3330_v36  ;;  %p2722_p1 = pnand %p2721_p12, %p2715_p3 }
 0x43d   : > { %2325 = vmatmul.mubr.f32.gmra.mrb[8].mxu1 %v853_v2  ;;  %1023 = vmatprep.mubr.f32.mxu0 %v2793_v8  ;;  %v860_v0 = vadd.f32 %v3363_v20, %v822_v11  ;;  %v826_v29 = vmul.f32 %v3358_v9, %v3342_v41  ;;  %v827_v37 = vmul.f32 %v3358_v9, %v3346_v44  ;;  %v938_v22 = vsub.s32 1, %v3176_v51 }
 0x43e   : > { %2327 = vmatprep.mubr.f32.mxu1 %v854_v42  ;;  %v861_v6 = vadd.f32 %v3363_v20, %v823_v34  ;;  %v862_v12 = vadd.f32 %v3363_v20, %v824_v35  ;;  %v863_v21 = vadd.f32 %v3363_v20, %v825_v4  ;;  %v828_v36 = vmul.f32 %v3358_v9, %v3186_v58 }
 0x43f   : > { %v864_v13 = vadd.f32 %v3363_v20, %v826_v29  ;;  %v865_v41 = vadd.f32 %v3363_v20, %v827_v37  ;;  %v829_v16 = vmul.f32 %v3358_v9, %v3190_v52  ;;  %v830_v44 = vmul.f32 %v3358_v9, %v3202_v61 }
 0x440   : > { %1024 = vmatmul.mubr.f32.gmra.mrb[6].mxu0 %v852_v59  ;;  %v866_v17 = vadd.f32 %v3363_v20, %v828_v36  ;;  %v831_v39 = vmul.f32 %v3358_v9, %v3206_v1  ;;  %v832_v52 = vmul.f32 %v3358_v9, %v3232_v14  ;;  %v833_v60 = vmul.f32 %v3358_v9, %v3236_v15 }
 0x441   : > { %2328 = vmatmul.mubr.f32.gmra.mrb[10].mxu1 %v855_v46  ;;  %1029 = vmatprep.mubr.f32.mxu0 %v2793_v8  ;;  %v867_v58 = vadd.f32 %v3363_v20, %v829_v16  ;;  %v868_v59 = vadd.f32 %v3363_v20, %v830_v44  ;;  %v834_v1 = vmul.f32 %v3358_v9, %v3254_v32 }
 0x442   : > { %2330 = vmatprep.mubr.f32.mxu1 %v856_v50  ;;  %v869_v61 = vadd.f32 %v3363_v20, %v831_v39  ;;  %v871_v14 = vadd.f32 %v3363_v20, %v833_v60  ;;  %v835_v40 = vmul.f32 %v3358_v9, %v3258_v33  ;;  %v836_v15 = vmul.f32 %v3358_v9, %v3278_v48 }
 0x443   : > { %v872_v3 = vadd.f32 %v3363_v20, %v834_v1  ;;  %v838_v19 = vmul.f32 %v3358_v9, %v3296_v25  ;;  %v875_v33 = vadd.f32 %v3363_v20, %v3402_v56  ;;  %v877_v43 = vadd.f32 %v3363_v20, %v3407_v5 }
 0x444   : > { %1030 = vmatmul.mubr.f32.gmra.mrb[8].mxu0 %v853_v2  ;;  %v870_v2 = vadd.f32 %v3363_v20, %v832_v52  ;;  %v873_v32 = vadd.f32 %v3363_v20, %v835_v40  ;;  %v878_v25 = vadd.f32 %v3363_v20, %v3413_v54  ;;  %v879_v9 = vadd.f32 %v3363_v20, %v3418_v7 }
 0x445   : > { %2331 = vmatmul.mubr.f32.gmra.mrb[12].mxu1 %v857_v30  ;;  %1035 = vmatprep.mubr.f32.mxu0 %v2793_v8  ;;  %v876_v48 = vadd.f32 %v3363_v20, %v838_v19  ;;  %v880_v26 = vadd.f32 %v3363_v20, %v3421_v10  ;;  %v881_v45 = vadd.f32 %v3363_v20, %v3424_v63 }
 0x446   : > { %2333 = vmatprep.mubr.f32.mxu1 %v858_v57 }
 0x448   : > { %1036 = vmatmul.mubr.f32.gmra.mrb[10].mxu0 %v854_v42  ;;  %v874_v42 = vadd.f32 %v3363_v20, %v836_v15  ;;  %v930_v20 = vld [vmem:[%s3747_s5] sm:$0x7] }
 0x449   : > { %2334 = vmatmul.mubr.f32.gmra.mrb[14].mxu1 %v859_v24  ;;  %1041 = vmatprep.mubr.f32.mxu0 %v2793_v8  ;;  %v3522_v27 = vrot.slane %v930_v20, %v3179_v53  ;;  %v3524_v23 = vrot.slane %v930_v20, %v938_v22 }
 0x44a   : > { %2336 = vmatprep.mubr.f32.mxu1 %v860_v0 }
 0x44c   : > { %1042 = vmatmul.mubr.f32.gmra.mrb[12].mxu0 %v855_v46  ;;  %v3526_v46 = vrot.slane %v930_v20, %v942_v49 }
 0x44d   : > { %2337 = vmatmul.mubr.f32.gmra.mrb[16].mxu1 %v861_v6  ;;  %1047 = vmatprep.mubr.f32.mxu0 %v2793_v8 }
 0x44e   : > { %2339 = vmatprep.mubr.f32.mxu1 %v862_v12 }
 0x450   : > { %1048 = vmatmul.mubr.f32.gmra.mrb[14].mxu0 %v856_v50 }
 0x451   : > { %2340 = vmatmul.mubr.f32.gmra.mrb[18].mxu1 %v863_v21  ;;  %1053 = vmatprep.mubr.f32.mxu0 %v2793_v8 }
 0x452   : > { %2342 = vmatprep.mubr.f32.mxu1 %v864_v13 }
 0x454   : > { %1054 = vmatmul.mubr.f32.gmra.mrb[16].mxu0 %v857_v30 }
 0x455   : > { %2343 = vmatmul.mubr.f32.gmra.mrb[20].mxu1 %v865_v41  ;;  %1059 = vmatprep.mubr.f32.mxu0 %v2793_v8 }
 0x456   : > { %2345 = vmatprep.mubr.f32.mxu1 %v866_v17 }
 0x458   : > { %1060 = vmatmul.mubr.f32.gmra.mrb[18].mxu0 %v858_v57 }
 0x459   : > { %2346 = vmatmul.mubr.f32.gmra.mrb[22].mxu1 %v867_v58  ;;  %1065 = vmatprep.mubr.f32.mxu0 %v2793_v8 }
 0x45a   : > { %2348 = vmatprep.mubr.f32.mxu1 %v868_v59 }
 0x45c   : > { %1066 = vmatmul.mubr.f32.gmra.mrb[20].mxu0 %v859_v24 }
 0x45d   : > { %2349 = vmatmul.mubr.f32.gmra.mrb[24].mxu1 %v869_v61  ;;  %1071 = vmatprep.mubr.f32.mxu0 %v2793_v8 }
 0x45e   : > { %2351 = vmatprep.mubr.f32.mxu1 %v870_v2 }
 0x460   : > { %1072 = vmatmul.mubr.f32.gmra.mrb[22].mxu0 %v860_v0 }
 0x461   : > { %2352 = vmatmul.mubr.f32.gmra.mrb[26].mxu1 %v871_v14  ;;  %1077 = vmatprep.mubr.f32.mxu0 %v2793_v8 }
 0x462   : > { %2354 = vmatprep.mubr.f32.mxu1 %v872_v3 }
 0x464   : > { %1078 = vmatmul.mubr.f32.gmra.mrb[24].mxu0 %v861_v6 }
 0x465   : > { %2355 = vmatmul.mubr.f32.gmra.mrb[28].mxu1 %v873_v32  ;;  %1083 = vmatprep.mubr.f32.mxu0 %v2793_v8 }
 0x466   : > { %2357 = vmatprep.mubr.f32.mxu1 %v874_v42 }
 0x468   : > { %1084 = vmatmul.mubr.f32.gmra.mrb[26].mxu0 %v862_v12 }
 0x469   : > { %2358 = vmatmul.mubr.f32.gmra.mrb[30].mxu1 %v875_v33  ;;  %1089 = vmatprep.mubr.f32.mxu0 %v2793_v8 }
 0x46a   : > { %2360 = vmatprep.mubr.f32.mxu1 %v876_v48 }
 0x46c   : > { %1090 = vmatmul.mubr.f32.gmra.mrb[28].mxu0 %v863_v21 }
 0x46d   : > { %2361 = vmatmul.mubr.f32.gmra.mrb[32].mxu1 %v877_v43  ;;  %1095 = vmatprep.mubr.f32.mxu0 %v2793_v8 }
 0x46e   : > { %2363 = vmatprep.mubr.f32.mxu1 %v878_v25 }
 0x470   : > { %1096 = vmatmul.mubr.f32.gmra.mrb[30].mxu0 %v864_v13 }
 0x471   : > { %2364 = vmatmul.mubr.f32.gmra.mrb[34].mxu1 %v879_v9  ;;  %1101 = vmatprep.mubr.f32.mxu0 %v2793_v8 }
 0x472   : > { %2366 = vmatprep.mubr.f32.mxu1 %v880_v26 }
 0x474   : > { %1102 = vmatmul.mubr.f32.gmra.mrb[32].mxu0 %v865_v41 }
 0x475   : > { %2367 = vmatmul.mubr.f32.gmra.mrb[36].mxu1 %v881_v45  ;;  %1107 = vmatprep.mubr.f32.mxu0 %v2793_v8 }
 0x478   : > { %1108 = vmatmul.mubr.f32.gmra.mrb[34].mxu0 %v866_v17 }
 0x479   : > { %1113 = vmatprep.mubr.f32.mxu0 %v2793_v8 }
 0x47c   : > { %1114 = vmatmul.mubr.f32.gmra.mrb[36].mxu0 %v867_v58 }
 0x47d   : > { %1119 = vmatprep.mubr.f32.mxu0 %v2793_v8 }
 0x480   : > { %1120 = vmatmul.mubr.f32.gmra.mrb[38].mxu0 %v868_v59 }
 0x481   : > { %1125 = vmatprep.mubr.f32.mxu0 %v2793_v8 }
 0x484   : > { %1126 = vmatmul.mubr.f32.gmra.mrb[40].mxu0 %v869_v61 }
 0x485   : > { %1131 = vmatprep.mubr.f32.mxu0 %v2793_v8 }
 0x488   : > { %1132 = vmatmul.mubr.f32.gmra.mrb[42].mxu0 %v870_v2 }
 0x489   : > { %1137 = vmatprep.mubr.f32.mxu0 %v2793_v8 }
 0x48c   : > { %1138 = vmatmul.mubr.f32.gmra.mrb[44].mxu0 %v871_v14 }
 0x48d   : > { %1143 = vmatprep.mubr.f32.mxu0 %v2793_v8 }
 0x490   : > { %1144 = vmatmul.mubr.f32.gmra.mrb[46].mxu0 %v872_v3 }
 0x491   : > { %1149 = vmatprep.mubr.f32.mxu0 %v2793_v8 }
 0x494   : > { %1150 = vmatmul.mubr.f32.gmra.mrb[48].mxu0 %v873_v32 }
 0x495   : > { %1155 = vmatprep.mubr.f32.mxu0 %v2793_v8 }
 0x498   : > { %1156 = vmatmul.mubr.f32.gmra.mrb[50].mxu0 %v874_v42 }
 0x499   : > { %1161 = vmatprep.mubr.f32.mxu0 %v2793_v8 }
 0x49c   : > { %1162 = vmatmul.mubr.f32.gmra.mrb[52].mxu0 %v875_v33 }
 0x49d   : > { %1167 = vmatprep.mubr.f32.mxu0 %v2793_v8 }
 0x4a0   : > { %1168 = vmatmul.mubr.f32.gmra.mrb[54].mxu0 %v876_v48 }
 0x4a1   : > { %1173 = vmatprep.mubr.f32.mxu0 %v2793_v8 }
 0x4a4   : > { %1174 = vmatmul.mubr.f32.gmra.mrb[56].mxu0 %v877_v43 }
 0x4a5   : > { %1179 = vmatprep.mubr.f32.mxu0 %v2793_v8 }
 0x4a8   : > { %1180 = vmatmul.mubr.f32.gmra.mrb[58].mxu0 %v878_v25 }
 0x4a9   : > { %1185 = vmatprep.mubr.f32.mxu0 %v2793_v8 }
 0x4ac   : > { %1186 = vmatmul.mubr.f32.gmra.mrb[60].mxu0 %v879_v9 }
 0x4ad   : > { %1191 = vmatprep.mubr.f32.mxu0 %v2793_v8 }
 0x4b0   : > { %1192 = vmatmul.mubr.f32.gmra.mrb[62].mxu0 %v880_v26 }
 0x4b1   : > { %1197 = vmatprep.mubr.f32.mxu0 %v2793_v8 }
 0x4b4   : > { %1198 = vmatmul.mubr.f32.gmra.mrb[64].mxu0 %v881_v45 }
 0x50b   : > { %v1013_v47 = vpop.f32.mrb[2].mxu0 }
 0x50c   : > { %v1014_v8 = vadd.f32 %v1013_v47, %v3522_v27  ;;  %v1015_v38 = vpop.f32.mrb[3].mxu0  ;;  %v2323_v50 = vpop.f32.mrb[6].mxu1 }
 0x50d   : > { %v1016_v55 = vadd.f32 %v1015_v38, %v3524_v23  ;;  %v1276_v56 = vadd.f32 %v2323_v50, %v3526_v46  ;;  %v1270_v18 = vpop.f32.mrb[7].mxu1 }
 0x50e   : > { %v1271_v51 = vadd.f32 %v1270_v18, %v3526_v46 }
 0x50f   : > { %v2003_v5 = vpack.c.bf16 %v1016_v55, %v1014_v8  ;;  %v2006_v53 = vpack.c.bf16 %v1276_v56, %v1276_v56  ;;  %v1019_v62 = vpop.f32.mrb[4].mxu0 }
 0x510   : > { %v2004_v28 = vpack.c.bf16 %v1271_v51, %v1271_v51  ;;  %v1020_v30 = vadd.f32 %v1019_v62, %v3522_v27  ;;  %v1021_v54 = vpop.f32.mrb[5].mxu0  ;;  %v2326_v31 = vpop.f32.mrb[8].mxu1 }
 0x511   : > { %1752 = vst [vmem:[%s3534_s11] sm:$0xff] %v2003_v5  ;;  %1755 = vst [vmem:[%s3534_s11 + $0x14] sm:$0xf] %v2006_v53  ;;  %v1022_v7 = vadd.f32 %v1021_v54, %v3524_v23  ;;  %v1286_v10 = vadd.f32 %v2326_v31, %v3526_v46  ;;  %v1280_v63 = vpop.f32.mrb[9].mxu1 }
 0x512   : > { %1753 = vst [vmem:[%s3534_s11 + $0x8] sm:$0xf] %v2004_v28  ;;  %v1281_v57 = vadd.f32 %v1280_v63, %v3526_v46 }
 0x513   : > { %v2005_v11 = vpack.c.bf16 %v1022_v7, %v1020_v30  ;;  %v2010_v24 = vpack.c.bf16 %v1286_v10, %v1286_v10  ;;  %v1025_v34 = vpop.f32.mrb[6].mxu0 }
 0x514   : > { %v2008_v0 = vpack.c.bf16 %v1281_v57, %v1281_v57  ;;  %v1026_v35 = vadd.f32 %v1025_v34, %v3522_v27  ;;  %v1027_v6 = vpop.f32.mrb[7].mxu0  ;;  %v2329_v4 = vpop.f32.mrb[10].mxu1 }
 0x515   : > { %1754 = vst [vmem:[%s3534_s11 + $0xc] sm:$0xff] %v2005_v11  ;;  %1759 = vst [vmem:[%s3534_s11 + $0x2c] sm:$0xf] %v2010_v24  ;;  %v1028_v12 = vadd.f32 %v1027_v6, %v3524_v23  ;;  %v1296_v29 = vadd.f32 %v2329_v4, %v3526_v46  ;;  %v1290_v21 = vpop.f32.mrb[11].mxu1 }
 0x516   : > { %1757 = vst [vmem:[%s3534_s11 + $0x20] sm:$0xf] %v2008_v0  ;;  %v1291_v37 = vadd.f32 %v1290_v21, %v3526_v46 }
 0x517   : > { %v2007_v13 = vpack.c.bf16 %v1028_v12, %v1026_v35  ;;  %v2014_v36 = vpack.c.bf16 %v1296_v29, %v1296_v29  ;;  %v1031_v41 = vpop.f32.mrb[8].mxu0 }
 0x518   : > { %v2012_v16 = vpack.c.bf16 %v1291_v37, %v1291_v37  ;;  %v1032_v17 = vadd.f32 %v1031_v41, %v3522_v27  ;;  %v1033_v44 = vpop.f32.mrb[9].mxu0  ;;  %v2332_v58 = vpop.f32.mrb[12].mxu1 }
 0x519   : > { %1756 = vst [vmem:[%s3534_s11 + $0x18] sm:$0xff] %v2007_v13  ;;  %1763 = vst [vmem:[%s3534_s11 + $0x44] sm:$0xf] %v2014_v36  ;;  %v1034_v39 = vadd.f32 %v1033_v44, %v3524_v23  ;;  %v1306_v59 = vadd.f32 %v2332_v58, %v3526_v46  ;;  %v1300_v52 = vpop.f32.mrb[13].mxu1 }
 0x51a   : > { %1761 = vst [vmem:[%s3534_s11 + $0x38] sm:$0xf] %v2012_v16  ;;  %v1301_v61 = vadd.f32 %v1300_v52, %v3526_v46 }
 0x51b   : > { %v2009_v60 = vpack.c.bf16 %v1034_v39, %v1032_v17  ;;  %v2018_v2 = vpack.c.bf16 %v1306_v59, %v1306_v59  ;;  %v1037_v1 = vpop.f32.mrb[10].mxu0 }
 0x51c   : > { %v2016_v14 = vpack.c.bf16 %v1301_v61, %v1301_v61  ;;  %v1038_v40 = vadd.f32 %v1037_v1, %v3522_v27  ;;  %v1039_v3 = vpop.f32.mrb[11].mxu0  ;;  %v2335_v15 = vpop.f32.mrb[14].mxu1 }
 0x51d   : > { %1758 = vst [vmem:[%s3534_s11 + $0x24] sm:$0xff] %v2009_v60  ;;  %1767 = vst [vmem:[%s3534_s11 + $0x5c] sm:$0xf] %v2018_v2  ;;  %v1040_v32 = vadd.f32 %v1039_v3, %v3524_v23  ;;  %v1316_v42 = vadd.f32 %v2335_v15, %v3526_v46  ;;  %v1310_v19 = vpop.f32.mrb[15].mxu1 }
 0x51e   : > { %1765 = vst [vmem:[%s3534_s11 + $0x50] sm:$0xf] %v2016_v14  ;;  %v1311_v33 = vadd.f32 %v1310_v19, %v3526_v46 }
 0x51f   : > { %v2011_v48 = vpack.c.bf16 %v1040_v32, %v1038_v40  ;;  %v2022_v43 = vpack.c.bf16 %v1316_v42, %v1316_v42  ;;  %v1043_v25 = vpop.f32.mrb[12].mxu0 }
 0x520   : > { %v2020_v9 = vpack.c.bf16 %v1311_v33, %v1311_v33  ;;  %v1044_v26 = vadd.f32 %v1043_v25, %v3522_v27  ;;  %v1045_v45 = vpop.f32.mrb[13].mxu0  ;;  %v2338_v20 = vpop.f32.mrb[16].mxu1 }
 0x521   : > { %1760 = vst [vmem:[%s3534_s11 + $0x30] sm:$0xff] %v2011_v48  ;;  %1771 = vst [vmem:[%s3534_s11 + $0x74] sm:$0xf] %v2022_v43  ;;  %v1046_v22 = vadd.f32 %v1045_v45, %v3524_v23  ;;  %v1326_v49 = vadd.f32 %v2338_v20, %v3526_v46  ;;  %v1320_v47 = vpop.f32.mrb[17].mxu1 }
 0x522   : > { %1769 = vst [vmem:[%s3534_s11 + $0x68] sm:$0xf] %v2020_v9  ;;  %v1321_v8 = vadd.f32 %v1320_v47, %v3526_v46 }
 0x523   : > { %v2013_v38 = vpack.c.bf16 %v1046_v22, %v1044_v26  ;;  %v2026_v50 = vpack.c.bf16 %v1326_v49, %v1326_v49  ;;  %v1049_v55 = vpop.f32.mrb[14].mxu0 }
 0x524   : > { %v2024_v56 = vpack.c.bf16 %v1321_v8, %v1321_v8  ;;  %v1050_v18 = vadd.f32 %v1049_v55, %v3522_v27  ;;  %v1051_v51 = vpop.f32.mrb[15].mxu0  ;;  %v2341_v5 = vpop.f32.mrb[18].mxu1 }
 0x525   : > { %1762 = vst [vmem:[%s3534_s11 + $0x3c] sm:$0xff] %v2013_v38  ;;  %1775 = vst [vmem:[%s3534_s11 + $0x8c] sm:$0xf] %v2026_v50  ;;  %v1052_v53 = vadd.f32 %v1051_v51, %v3524_v23  ;;  %v1336_v62 = vadd.f32 %v2341_v5, %v3526_v46  ;;  %v1330_v28 = vpop.f32.mrb[19].mxu1 }
 0x526   : > { %1773 = vst [vmem:[%s3534_s11 + $0x80] sm:$0xf] %v2024_v56  ;;  %v1331_v30 = vadd.f32 %v1330_v28, %v3526_v46 }
 0x527   : > { %v2015_v54 = vpack.c.bf16 %v1052_v53, %v1050_v18  ;;  %v2030_v31 = vpack.c.bf16 %v1336_v62, %v1336_v62  ;;  %v1055_v7 = vpop.f32.mrb[16].mxu0 }
 0x528   : > { %v2028_v10 = vpack.c.bf16 %v1331_v30, %v1331_v30  ;;  %v1056_v63 = vadd.f32 %v1055_v7, %v3522_v27  ;;  %v1057_v57 = vpop.f32.mrb[17].mxu0  ;;  %v2344_v11 = vpop.f32.mrb[20].mxu1 }
 0x529   : > { %1764 = vst [vmem:[%s3534_s11 + $0x48] sm:$0xff] %v2015_v54  ;;  %1779 = vst [vmem:[%s3534_s11 + $0xa4] sm:$0xf] %v2030_v31  ;;  %v1058_v24 = vadd.f32 %v1057_v57, %v3524_v23  ;;  %v1346_v34 = vadd.f32 %v2344_v11, %v3526_v46  ;;  %v1340_v0 = vpop.f32.mrb[21].mxu1 }
 0x52a   : > { %1777 = vst [vmem:[%s3534_s11 + $0x98] sm:$0xf] %v2028_v10  ;;  %v1341_v35 = vadd.f32 %v1340_v0, %v3526_v46 }
 0x52b   : > { %v2017_v6 = vpack.c.bf16 %v1058_v24, %v1056_v63  ;;  %v2034_v4 = vpack.c.bf16 %v1346_v34, %v1346_v34  ;;  %v1061_v12 = vpop.f32.mrb[18].mxu0 }
 0x52c   : > { %v2032_v29 = vpack.c.bf16 %v1341_v35, %v1341_v35  ;;  %v1062_v21 = vadd.f32 %v1061_v12, %v3522_v27  ;;  %v1063_v37 = vpop.f32.mrb[19].mxu0  ;;  %v2347_v13 = vpop.f32.mrb[22].mxu1 }
 0x52d   : > { %1766 = vst [vmem:[%s3534_s11 + $0x54] sm:$0xff] %v2017_v6  ;;  %1783 = vst [vmem:[%s3534_s11 + $0xbc] sm:$0xf] %v2034_v4  ;;  %v1064_v36 = vadd.f32 %v1063_v37, %v3524_v23  ;;  %v1356_v41 = vadd.f32 %v2347_v13, %v3526_v46  ;;  %v1350_v16 = vpop.f32.mrb[23].mxu1 }
 0x52e   : > { %1781 = vst [vmem:[%s3534_s11 + $0xb0] sm:$0xf] %v2032_v29  ;;  %v1351_v17 = vadd.f32 %v1350_v16, %v3526_v46 }
 0x52f   : > { %v2019_v44 = vpack.c.bf16 %v1064_v36, %v1062_v21  ;;  %v2038_v58 = vpack.c.bf16 %v1356_v41, %v1356_v41  ;;  %v1067_v39 = vpop.f32.mrb[20].mxu0 }
 0x530   : > { %v2036_v59 = vpack.c.bf16 %v1351_v17, %v1351_v17  ;;  %v1068_v52 = vadd.f32 %v1067_v39, %v3522_v27  ;;  %v1069_v61 = vpop.f32.mrb[21].mxu0  ;;  %v2350_v60 = vpop.f32.mrb[24].mxu1 }
 0x531   : > { %1768 = vst [vmem:[%s3534_s11 + $0x60] sm:$0xff] %v2019_v44  ;;  %1787 = vst [vmem:[%s3534_s11 + $0xd4] sm:$0xf] %v2038_v58  ;;  %v1070_v2 = vadd.f32 %v1069_v61, %v3524_v23  ;;  %v1366_v1 = vadd.f32 %v2350_v60, %v3526_v46  ;;  %v1360_v14 = vpop.f32.mrb[25].mxu1 }
 0x532   : > { %1785 = vst [vmem:[%s3534_s11 + $0xc8] sm:$0xf] %v2036_v59  ;;  %v1361_v40 = vadd.f32 %v1360_v14, %v3526_v46 }
 0x533   : > { %v2021_v3 = vpack.c.bf16 %v1070_v2, %v1068_v52  ;;  %v2042_v15 = vpack.c.bf16 %v1366_v1, %v1366_v1  ;;  %v1073_v32 = vpop.f32.mrb[22].mxu0 }
 0x534   : > { %v2040_v42 = vpack.c.bf16 %v1361_v40, %v1361_v40  ;;  %v1074_v19 = vadd.f32 %v1073_v32, %v3522_v27  ;;  %v1075_v33 = vpop.f32.mrb[23].mxu0  ;;  %v2353_v48 = vpop.f32.mrb[26].mxu1 }
 0x535   : > { %1770 = vst [vmem:[%s3534_s11 + $0x6c] sm:$0xff] %v2021_v3  ;;  %1791 = vst [vmem:[%s3534_s11 + $0xec] sm:$0xf] %v2042_v15  ;;  %v1076_v43 = vadd.f32 %v1075_v33, %v3524_v23  ;;  %v1376_v25 = vadd.f32 %v2353_v48, %v3526_v46  ;;  %v1370_v9 = vpop.f32.mrb[27].mxu1 }
 0x536   : > { %1789 = vst [vmem:[%s3534_s11 + $0xe0] sm:$0xf] %v2040_v42  ;;  %v1371_v26 = vadd.f32 %v1370_v9, %v3526_v46 }
 0x537   : > { %v2023_v45 = vpack.c.bf16 %v1076_v43, %v1074_v19  ;;  %v2046_v20 = vpack.c.bf16 %v1376_v25, %v1376_v25  ;;  %v1079_v22 = vpop.f32.mrb[24].mxu0 }
 0x538   : > { %v2044_v49 = vpack.c.bf16 %v1371_v26, %v1371_v26  ;;  %v1080_v47 = vadd.f32 %v1079_v22, %v3522_v27  ;;  %v1081_v8 = vpop.f32.mrb[25].mxu0  ;;  %v2356_v38 = vpop.f32.mrb[28].mxu1 }
 0x539   : > { %1772 = vst [vmem:[%s3534_s11 + $0x78] sm:$0xff] %v2023_v45  ;;  %1795 = vst [vmem:[%s3534_s11 + $0x104] sm:$0xf] %v2046_v20  ;;  %v1082_v50 = vadd.f32 %v1081_v8, %v3524_v23  ;;  %v1386_v55 = vadd.f32 %v2356_v38, %v3526_v46  ;;  %v1380_v56 = vpop.f32.mrb[29].mxu1 }
 0x53a   : > { %1793 = vst [vmem:[%s3534_s11 + $0xf8] sm:$0xf] %v2044_v49  ;;  %v1381_v18 = vadd.f32 %v1380_v56, %v3526_v46 }
 0x53b   : > { %v2025_v51 = vpack.c.bf16 %v1082_v50, %v1080_v47  ;;  %v2050_v5 = vpack.c.bf16 %v1386_v55, %v1386_v55  ;;  %v1085_v53 = vpop.f32.mrb[26].mxu0 }
 0x53c   : > { %v2048_v62 = vpack.c.bf16 %v1381_v18, %v1381_v18  ;;  %v1086_v28 = vadd.f32 %v1085_v53, %v3522_v27  ;;  %v1087_v30 = vpop.f32.mrb[27].mxu0  ;;  %v2359_v54 = vpop.f32.mrb[30].mxu1 }
 0x53d   : > { %1774 = vst [vmem:[%s3534_s11 + $0x84] sm:$0xff] %v2025_v51  ;;  %1799 = vst [vmem:[%s3534_s11 + $0x11c] sm:$0xf] %v2050_v5  ;;  %v1088_v31 = vadd.f32 %v1087_v30, %v3524_v23  ;;  %v1396_v7 = vadd.f32 %v2359_v54, %v3526_v46  ;;  %v1390_v10 = vpop.f32.mrb[31].mxu1 }
 0x53e   : > { %1797 = vst [vmem:[%s3534_s11 + $0x110] sm:$0xf] %v2048_v62  ;;  %v1391_v63 = vadd.f32 %v1390_v10, %v3526_v46 }
 0x53f   : > { %v2027_v57 = vpack.c.bf16 %v1088_v31, %v1086_v28  ;;  %v2054_v11 = vpack.c.bf16 %v1396_v7, %v1396_v7  ;;  %v1091_v24 = vpop.f32.mrb[28].mxu0 }
 0x540   : > { %v2052_v34 = vpack.c.bf16 %v1391_v63, %v1391_v63  ;;  %v1092_v0 = vadd.f32 %v1091_v24, %v3522_v27  ;;  %v1093_v35 = vpop.f32.mrb[29].mxu0  ;;  %v2362_v6 = vpop.f32.mrb[32].mxu1 }
 0x541   : > { %1776 = vst [vmem:[%s3534_s11 + $0x90] sm:$0xff] %v2027_v57  ;;  %1803 = vst [vmem:[%s3534_s11 + $0x134] sm:$0xf] %v2054_v11  ;;  %v1094_v4 = vadd.f32 %v1093_v35, %v3524_v23  ;;  %v1406_v12 = vadd.f32 %v2362_v6, %v3526_v46  ;;  %v1400_v29 = vpop.f32.mrb[33].mxu1 }
 0x542   : > { %1801 = vst [vmem:[%s3534_s11 + $0x128] sm:$0xf] %v2052_v34  ;;  %v1401_v21 = vadd.f32 %v1400_v29, %v3526_v46 }
 0x543   : > { %v2029_v37 = vpack.c.bf16 %v1094_v4, %v1092_v0  ;;  %v2058_v13 = vpack.c.bf16 %v1406_v12, %v1406_v12  ;;  %v1097_v36 = vpop.f32.mrb[30].mxu0 }
 0x544   : > { %v2056_v41 = vpack.c.bf16 %v1401_v21, %v1401_v21  ;;  %v1098_v16 = vadd.f32 %v1097_v36, %v3522_v27  ;;  %v1099_v17 = vpop.f32.mrb[31].mxu0  ;;  %v2365_v44 = vpop.f32.mrb[34].mxu1 }
 0x545   : > { %1778 = vst [vmem:[%s3534_s11 + $0x9c] sm:$0xff] %v2029_v37  ;;  %1807 = vst [vmem:[%s3534_s11 + $0x14c] sm:$0xf] %v2058_v13  ;;  %v1100_v58 = vadd.f32 %v1099_v17, %v3524_v23  ;;  %v1416_v39 = vadd.f32 %v2365_v44, %v3526_v46  ;;  %v1410_v59 = vpop.f32.mrb[35].mxu1 }
 0x546   : > { %1805 = vst [vmem:[%s3534_s11 + $0x140] sm:$0xf] %v2056_v41  ;;  %v1411_v52 = vadd.f32 %v1410_v59, %v3526_v46 }
 0x547   : > { %v2031_v61 = vpack.c.bf16 %v1100_v58, %v1098_v16  ;;  %v2062_v60 = vpack.c.bf16 %v1416_v39, %v1416_v39  ;;  %v1103_v2 = vpop.f32.mrb[32].mxu0 }
 0x548   : > { %v2060_v1 = vpack.c.bf16 %v1411_v52, %v1411_v52  ;;  %v1104_v14 = vadd.f32 %v1103_v2, %v3522_v27  ;;  %v1105_v40 = vpop.f32.mrb[33].mxu0  ;;  %v2368_v3 = vpop.f32.mrb[36].mxu1 }
 0x549   : > { %1780 = vst [vmem:[%s3534_s11 + $0xa8] sm:$0xff] %v2031_v61  ;;  %1811 = vst [vmem:[%s3534_s11 + $0x164] sm:$0xf] %v2062_v60  ;;  %v1106_v15 = vadd.f32 %v1105_v40, %v3524_v23  ;;  %v1426_v32 = vadd.f32 %v2368_v3, %v3526_v46  ;;  %v1420_v42 = vpop.f32.mrb[37].mxu1 }
 0x54a   : > { %1809 = vst [vmem:[%s3534_s11 + $0x158] sm:$0xf] %v2060_v1  ;;  %v1421_v19 = vadd.f32 %v1420_v42, %v3526_v46 }
 0x54b   : > { %v2033_v33 = vpack.c.bf16 %v1106_v15, %v1104_v14  ;;  %v2066_v48 = vpack.c.bf16 %v1426_v32, %v1426_v32  ;;  %v1109_v43 = vpop.f32.mrb[34].mxu0 }
 0x54c   : > { %v2064_v25 = vpack.c.bf16 %v1421_v19, %v1421_v19  ;;  %v1110_v9 = vadd.f32 %v1109_v43, %v3522_v27  ;;  %v1111_v26 = vpop.f32.mrb[35].mxu0 }
 0x54d   : > { %1782 = vst [vmem:[%s3534_s11 + $0xb4] sm:$0xff] %v2033_v33  ;;  %1815 = vst [vmem:[%s3534_s11 + $0x17c] sm:$0xf] %v2066_v48  ;;  %v1112_v45 = vadd.f32 %v1111_v26, %v3524_v23 }
 0x54e   : > { %1813 = vst [vmem:[%s3534_s11 + $0x170] sm:$0xf] %v2064_v25 }
 0x54f   : > { %v2035_v20 = vpack.c.bf16 %v1112_v45, %v1110_v9  ;;  %v1115_v22 = vpop.f32.mrb[36].mxu0 }
 0x550   : > { %v1116_v49 = vadd.f32 %v1115_v22, %v3522_v27  ;;  %v1117_v47 = vpop.f32.mrb[37].mxu0 }
 0x551   : > { %1784 = vst [vmem:[%s3534_s11 + $0xc0] sm:$0xff] %v2035_v20  ;;  %v1118_v46 = vadd.f32 %v1117_v47, %v3524_v23 }
 0x553   : > { %v2037_v8 = vpack.c.bf16 %v1118_v46, %v1116_v49  ;;  %v1121_v38 = vpop.f32.mrb[38].mxu0 }
 0x554   : > { %v1122_v50 = vadd.f32 %v1121_v38, %v3522_v27  ;;  %v1123_v55 = vpop.f32.mrb[39].mxu0 }
 0x555   : > { %1786 = vst [vmem:[%s3534_s11 + $0xcc] sm:$0xff] %v2037_v8  ;;  %v1124_v56 = vadd.f32 %v1123_v55, %v3524_v23 }
 0x557   : > { %v2039_v18 = vpack.c.bf16 %v1124_v56, %v1122_v50  ;;  %v1127_v51 = vpop.f32.mrb[40].mxu0 }
 0x558   : > { %v1128_v5 = vadd.f32 %v1127_v51, %v3522_v27  ;;  %v1129_v53 = vpop.f32.mrb[41].mxu0 }
 0x559   : > { %1788 = vst [vmem:[%s3534_s11 + $0xd8] sm:$0xff] %v2039_v18  ;;  %v1130_v62 = vadd.f32 %v1129_v53, %v3524_v23 }
 0x55b   : > { %v2041_v28 = vpack.c.bf16 %v1130_v62, %v1128_v5  ;;  %v1133_v30 = vpop.f32.mrb[42].mxu0 }
 0x55c   : > { %v1134_v54 = vadd.f32 %v1133_v30, %v3522_v27  ;;  %v1135_v31 = vpop.f32.mrb[43].mxu0 }
 0x55d   : > { %1790 = vst [vmem:[%s3534_s11 + $0xe4] sm:$0xff] %v2041_v28  ;;  %v1136_v7 = vadd.f32 %v1135_v31, %v3524_v23 }
 0x55f   : > { %v2043_v10 = vpack.c.bf16 %v1136_v7, %v1134_v54  ;;  %v1139_v63 = vpop.f32.mrb[44].mxu0 }
 0x560   : > { %v1140_v57 = vadd.f32 %v1139_v63, %v3522_v27  ;;  %v1141_v11 = vpop.f32.mrb[45].mxu0 }
 0x561   : > { %1792 = vst [vmem:[%s3534_s11 + $0xf0] sm:$0xff] %v2043_v10  ;;  %v1142_v24 = vadd.f32 %v1141_v11, %v3524_v23 }
 0x563   : > { %v2045_v34 = vpack.c.bf16 %v1142_v24, %v1140_v57  ;;  %v1145_v0 = vpop.f32.mrb[46].mxu0 }
 0x564   : > { %v1146_v35 = vadd.f32 %v1145_v0, %v3522_v27  ;;  %v1147_v6 = vpop.f32.mrb[47].mxu0 }
 0x565   : > { %1794 = vst [vmem:[%s3534_s11 + $0xfc] sm:$0xff] %v2045_v34  ;;  %v1148_v4 = vadd.f32 %v1147_v6, %v3524_v23 }
 0x567   : > { %v2047_v12 = vpack.c.bf16 %v1148_v4, %v1146_v35  ;;  %v1151_v29 = vpop.f32.mrb[48].mxu0 }
 0x568   : > { %v1152_v21 = vadd.f32 %v1151_v29, %v3522_v27  ;;  %v1153_v37 = vpop.f32.mrb[49].mxu0 }
 0x569   : > { %1796 = vst [vmem:[%s3534_s11 + $0x108] sm:$0xff] %v2047_v12  ;;  %v1154_v13 = vadd.f32 %v1153_v37, %v3524_v23 }
 0x56b   : > { %v2049_v36 = vpack.c.bf16 %v1154_v13, %v1152_v21  ;;  %v1157_v41 = vpop.f32.mrb[50].mxu0 }
 0x56c   : > { %v1158_v16 = vadd.f32 %v1157_v41, %v3522_v27  ;;  %v1159_v17 = vpop.f32.mrb[51].mxu0 }
 0x56d   : > { %1798 = vst [vmem:[%s3534_s11 + $0x114] sm:$0xff] %v2049_v36  ;;  %v1160_v44 = vadd.f32 %v1159_v17, %v3524_v23 }
 0x56f   : > { %v2051_v58 = vpack.c.bf16 %v1160_v44, %v1158_v16  ;;  %v1163_v39 = vpop.f32.mrb[52].mxu0 }
 0x570   : > { %v1164_v59 = vadd.f32 %v1163_v39, %v3522_v27  ;;  %v1165_v52 = vpop.f32.mrb[53].mxu0 }
 0x571   : > { %1800 = vst [vmem:[%s3534_s11 + $0x120] sm:$0xff] %v2051_v58  ;;  %v1166_v61 = vadd.f32 %v1165_v52, %v3524_v23 }
 0x573   : > { %v2053_v60 = vpack.c.bf16 %v1166_v61, %v1164_v59  ;;  %v1169_v2 = vpop.f32.mrb[54].mxu0 }
 0x574   : > { %v1170_v1 = vadd.f32 %v1169_v2, %v3522_v27  ;;  %v1171_v14 = vpop.f32.mrb[55].mxu0 }
 0x575   : > { %1802 = vst [vmem:[%s3534_s11 + $0x12c] sm:$0xff] %v2053_v60  ;;  %v1172_v40 = vadd.f32 %v1171_v14, %v3524_v23 }
 0x577   : > { %v2055_v3 = vpack.c.bf16 %v1172_v40, %v1170_v1  ;;  %v1175_v15 = vpop.f32.mrb[56].mxu0 }
 0x578   : > { %v1176_v32 = vadd.f32 %v1175_v15, %v3522_v27  ;;  %v1177_v42 = vpop.f32.mrb[57].mxu0 }
 0x579   : > { %1804 = vst [vmem:[%s3534_s11 + $0x138] sm:$0xff] %v2055_v3  ;;  %v1178_v19 = vadd.f32 %v1177_v42, %v3524_v23 }
 0x57b   : > { %v2057_v33 = vpack.c.bf16 %v1178_v19, %v1176_v32  ;;  %v1181_v48 = vpop.f32.mrb[58].mxu0 }
 0x57c   : > { %v1182_v43 = vadd.f32 %v1181_v48, %v3522_v27  ;;  %v1183_v25 = vpop.f32.mrb[59].mxu0 }
 0x57d   : > { %1806 = vst [vmem:[%s3534_s11 + $0x144] sm:$0xff] %v2057_v33  ;;  %v1184_v9 = vadd.f32 %v1183_v25, %v3524_v23 }
 0x57f   : > { %v2059_v26 = vpack.c.bf16 %v1184_v9, %v1182_v43  ;;  %v1187_v45 = vpop.f32.mrb[60].mxu0 }
 0x580   : > { %v1188_v20 = vadd.f32 %v1187_v45, %v3522_v27  ;;  %v1189_v22 = vpop.f32.mrb[61].mxu0 }
 0x581   : > { %1808 = vst [vmem:[%s3534_s11 + $0x150] sm:$0xff] %v2059_v26  ;;  %v1190_v49 = vadd.f32 %v1189_v22, %v3524_v23 }
 0x583   : > { %v2061_v47 = vpack.c.bf16 %v1190_v49, %v1188_v20  ;;  %v1193_v46 = vpop.f32.mrb[62].mxu0 }
 0x584   : > { %v1194_v8 = vadd.f32 %v1193_v46, %v3522_v27  ;;  %v1195_v38 = vpop.f32.mrb[63].mxu0 }
 0x585   : > { %1810 = vst [vmem:[%s3534_s11 + $0x15c] sm:$0xff] %v2061_v47  ;;  %v1196_v50 = vadd.f32 %v1195_v38, %v3524_v23 }
 0x587   : > { %v2063_v55 = vpack.c.bf16 %v1196_v50, %v1194_v8  ;;  %v1199_v56 = vpop.f32.mrb[64].mxu0 }
 0x588   : > { %v1200_v18 = vadd.f32 %v1199_v56, %v3522_v27  ;;  %v1201_v51 = vpop.f32.mrb[65].mxu0 }
 0x589   : > { %1812 = vst [vmem:[%s3534_s11 + $0x168] sm:$0xff] %v2063_v55  ;;  %v1202_v5 = vadd.f32 %v1201_v51, %v3524_v23 }
 0x58b   : > { %v2065_v53 = vpack.c.bf16 %v1202_v5, %v1200_v18 }
 0x58d   : > { %1814 = vst [vmem:[%s3534_s11 + $0x174] sm:$0xff] %v2065_v53 }
 0x58e   : > { %2725 = shalt.err (!%p2722_p1)
}
 0x58f   : > { %s2726_s20 = scalar_lea.hbm %s3695_s18, 6144  ;;  %s2730_s30 = scalar_lea.hbm %s3748_s6, 12288 }
 0x590   : > { %p2727_p13 = scmp.ne.s32.totalorder %s3695_s18, %s2726_s20  ;;  %p2731_p4 = scmp.lt.u32.totalorder %s3695_s18, %s3748_s6 }
 0x591   : > { %p2732_p7 = scmp.lt.u32.totalorder %s2730_s30, %s2726_s20  ;;  %p2734_p11 = scmp.lt.u32.totalorder %s2726_s20, %s3695_s18 }
 0x592   : > { %p2728_p6 = pnand %p2727_p13, %p3762_p0 }
 0x593   : > { %p2733_p8 = por %p2732_p7, %p2731_p4 }
 0x594   : > { %p2729_p10 = pneg %p2728_p6 }
 0x595   : > { %p2735_p2 = por %p2734_p11, %p2733_p8 }
 0x597   : > { %p2736_p3 = pnand %p2735_p2, %p2729_p10 }
 0x599   : > { %2739 = shalt.err (!%p2736_p3)
}
 0x59a   : > { %s2796_s7 = smov 192   ;;  %s2797_s16 = smov 12  }
 0x59b   : > { %2557 = dma.vmem_to_hbm [thread:$0]  (%p3762_p0), %s3697_s10, 6144, %s3695_s18, %s1817_s25, %s2796_s7, %s2796_s7, %s2797_s16  }
 0x59c PF: > { %s1845_s8 = sand.u32 1, %s2770_s21   ;;  %p3763_p5 = scmp.ne.s32.totalorder %s3753_s28, 0 }
 0x59d   : > { %p3764_p9 = scmp.ge.s32.totalorder %s2782_s24, 2  ;;  %s1846_s27 = scalar_lea.sflag [#allocation6], %s1845_s8 }
 0x59f   : > { %p2571_p12 = pnand %p3764_p9, %p3763_p5 }
 0x5a1   : > { %2765 = dma.done.wait (!%p2571_p12), %s1846_s27, 6144  }
 0x5a2   : > { %2767 = vsyncadd (!%p2571_p12), %s1846_s27, 4294961152  ;;  %p20_p1 = scmp.ge.s32.totalorder %s2946_s9, 4   ;;  %s3765_s21 = smov %s2774_s22 }
 0x5a3   : > { %s3766_s22 = smov %s2778_s23  ;;  %s3767_s23 = smov %s2955_s13 }
 0x5a4   : > { %s3768_s24 = smov %s2946_s9  ;;  %22 = sbr.rel (!%p20_p1) target bundleno = 6 (0x6), region = 98 }
 0x5ab   :  { %1851 = vsyncpa [#allocation5], 1 }
 0x5ac   :  { %1853 = vsyncpa [#allocation5 + $0x1], 1 }
 0x5ad   :  { %1854 = vsyncpa [#allocation8], 1 }
 0x5ae   :  { %1855 = vsyncpa [#allocation6], 1 }
 0x5af   :  { %1857 = vsyncpa [#allocation6 + $0x1], 1 }

</bundles_post_ra>
